<compile_context>
chip_gen: v7x
topology: tpu7x:2x2x1
jax: 0.10.0
libtpu: 0.0.40
codegen_flags: <defaults>
</compile_context>

<pallas_src>
import functools
import math

import jax
import jax.numpy as jnp
from jax import lax
from jax.experimental import pallas as pl
from jax.experimental.pallas import tpu as pltpu


LAYER_PARAM_NAMES = ("wq", "bq", "wk", "bk", "wv", "bv", "wo", "bo",
                     "g1", "be1", "w1", "b1", "w2", "b2", "g3", "be3")


# ----------------------------------------------------------------------------
# Fused kernel: one (batch, layer) grid point per invocation
# ----------------------------------------------------------------------------
def fused_transformer_kernel(x_ref, mask_ref, sel_ref,
                             wq_ref, bq_ref, wk_ref, bk_ref, wv_ref, bv_ref,
                             wo_ref, bo_ref, g1_ref, be1_ref,
                             w1_ref, b1_ref, w2_ref, b2_ref, g3_ref, be3_ref,
                             wout_ref, bout_ref,
                             o_ref, x_scr,
                             *, num_heads):
    f32, bf16 = jnp.float32, jnp.bfloat16
    layer = pl.program_id(1)
    last = pl.num_programs(1) - 1
    H = num_heads
    S, D = x_scr.shape
    hd = D // H

    # Activation: HBM input block on layer 0, VMEM-resident scratch afterwards
    # (no layer-0 store/reload round trip, scratch never read before written
    # for a given batch row-block because layer 0 always selects x_ref).
    x = jnp.where(layer == 0, x_ref[...], x_scr[...])          # (S, D) f32
    xb = x.astype(bf16)
    xh = jnp.broadcast_to(xb, (H, S, D))     # hoisted once; shared by q/k/v

    # ---- head-major QKV projections -> (H, S, hd); no per-head lane slicing.
    # The 1/sqrt(head_dim) attention scale is pre-folded into wq / bq.
    qh = jnp.einsum("hsd,hde->hse", xh, wq_ref[0],
                    preferred_element_type=f32) + bq_ref[0]
    kh = jnp.einsum("hsd,hde->hse", xh, wk_ref[0],
                    preferred_element_type=f32) + bk_ref[0]
    vh = jnp.einsum("hsd,hde->hse", xh, wv_ref[0],
                    preferred_element_type=f32) + bv_ref[0]

    # ---- causal self-attention, all heads batched in a single einsum pair ----
    s = jnp.einsum("hqe,hke->hqk", qh.astype(bf16), kh.astype(bf16),
                   preferred_element_type=f32)                 # (H, S, S)
    s = s + mask_ref[...]                                      # additive causal bias
    m = jnp.max(s, axis=-1, keepdims=True)
    p = jnp.exp(s - m)
    denom = jnp.sum(p, axis=-1, keepdims=True)
    p = p * pl.reciprocal(denom, approx=True)                  # EUP slot, off VALU
    vals = jnp.einsum("hqk,hke->hqe", p.astype(bf16), vh.astype(bf16),
                      preferred_element_type=f32)              # (H, S, hd)

    # ---- PyTorch's values.reshape(B, S, H*hd) (flat reinterpret, no permute)
    # mixes heads and positions.  In flat index space it is the identity, so it
    # is realised as:   gathered = Sel @ vals_flat   (one MXU matmul against a
    # precomputed 0/1 selection matrix), followed by per-head-block Wo matmuls
    # summed into the output projection.  No sub-vreg slices, no concats.
    vals_flat = vals.reshape(H * S, hd).astype(bf16)           # leading-dim merge
    gathered = jnp.dot(sel_ref[...], vals_flat,
                       preferred_element_type=f32)             # (H*S, hd)
    wo_heads = wo_ref[0]                                       # (H, hd, D) bf16
    attn = bo_ref[0]                                           # (1, D) f32
    for blk in range(H):                                       # tiny static loop
        attn = attn + jnp.dot(
            gathered[blk * S:(blk + 1) * S].astype(bf16),      # sublane-aligned
            wo_heads[blk], preferred_element_type=f32)

    # ---- residual + LayerNorm1 ----
    y = attn + x                                               # dropout1 == id
    mu = jnp.mean(y, axis=-1, keepdims=True)
    var = jnp.mean(jnp.square(y - mu), axis=-1, keepdims=True)
    y1 = (y - mu) * lax.rsqrt(var + 1e-5) * g1_ref[0] + be1_ref[0]

    # ---- position-wise FFN + residual + LayerNorm3 ----
    h1 = jnp.dot(y1.astype(bf16), w1_ref[0],
                 preferred_element_type=f32) + b1_ref[0]
    h1 = jnp.maximum(h1, 0.0)
    f = jnp.dot(h1.astype(bf16), w2_ref[0],
                preferred_element_type=f32) + b2_ref[0]
    y2 = f + y1                                                # dropout3 == id
    mu2 = jnp.mean(y2, axis=-1, keepdims=True)
    var2 = jnp.mean(jnp.square(y2 - mu2), axis=-1, keepdims=True)
    x_new = (y2 - mu2) * lax.rsqrt(var2 + 1e-5) * g3_ref[0] + be3_ref[0]

    # Carry the activation only while another layer still needs it.
    @pl.when(layer < last)
    def _():
        x_scr[...] = x_new

    # Fused, lane-padded (V -> 128) vocab projection on the last layer only.
    # NOTE: relies on the output block being resident across the layer axis.
    @pl.when(layer == last)
    def _():
        o_ref[...] = (jnp.dot(x_new.astype(bf16), wout_ref[...],
                              preferred_element_type=f32) + bout_ref[...])


# ----------------------------------------------------------------------------
# Host-side helpers (plain-JAX glue)
# ----------------------------------------------------------------------------
def causal_bias(seq):
    r = jnp.arange(seq)[:, None]
    c = jnp.arange(seq)[None, :]
    # Finite large-negative bias instead of -inf (no NaN hazard; exp -> 0).
    return jnp.where(c > r, jnp.float32(-1e30), jnp.float32(0.0))


def selection_matrix(seq, num_heads):
    """0/1 matrix realising PyTorch's (H,S,hd)->(S,H*hd) flat reinterpret.

    Row index r = m*S + s_out selects source row u = s_out*H + m of the
    h-major flattened (H*S, hd) per-head attention values.
    """
    hs = num_heads * seq
    rows = jnp.arange(hs)
    m = rows // seq
    s_out = rows % seq
    src = s_out * num_heads + m
    return (jnp.arange(hs)[None, :] == src[:, None]).astype(jnp.bfloat16)


def positional_encoding(d_model, seq_len):
    even_i = jnp.arange(0, d_model, 2, dtype=jnp.float32)
    denom = jnp.power(10000.0, even_i / d_model)
    position = jnp.arange(seq_len, dtype=jnp.float32).reshape(seq_len, 1)
    even_pe = jnp.sin(position / denom)
    odd_pe = jnp.cos(position / denom)
    return jnp.stack([even_pe, odd_pe], axis=2).reshape(seq_len, d_model)


# ----------------------------------------------------------------------------
# Wrapper
# ----------------------------------------------------------------------------
def transformer_forward_pallas(input_tokens, params, d_model, num_heads):
    B, S = input_tokens.shape
    D = d_model
    H = num_heads
    V = params["vocab_size"]
    V_pad = params["w_out_t"].shape[1]
    lw = params["layers"]
    L = lw["wq"].shape[0]

    # Glue (no Pallas benefit): embedding gather + positional encoding.
    emb = params["embedding"][input_tokens]                    # (B, S, D)
    pe = positional_encoding(D, S)                             # (S, D)
    x2d = (emb + pe[None, :, :]).astype(jnp.float32).reshape(B * S, D)
    mask = causal_bias(S)                                      # (S, S)
    sel = selection_matrix(S, H)                               # (H*S, H*S) bf16

    layer_args = [lw[name] for name in LAYER_PARAM_NAMES]      # each (L, ...)

    def stacked_spec(a):                                       # per-layer stream
        nz = a.ndim - 1
        return pl.BlockSpec((1,) + a.shape[1:], lambda b, l: (l,) + (0,) * nz)

    def resident_spec(a):                                      # constant index map
        nd = a.ndim
        # NOTE: pipeline_mode=pl.Buffered(1) would halve the (tiny) VMEM
        # footprint of these resident blocks; skipped here for API-portability.
        return pl.BlockSpec(a.shape, lambda b, l: (0,) * nd)

    in_specs = ([pl.BlockSpec((S, D), lambda b, l: (b, 0)),
                 resident_spec(mask),
                 resident_spec(sel)]
                + [stacked_spec(a) for a in layer_args]
                + [resident_spec(params["w_out_t"]),
                   resident_spec(params["b_out"])])

    kernel = functools.partial(fused_transformer_kernel, num_heads=H)

    logits2d = pl.pallas_call(
        kernel,
        out_shape=jax.ShapeDtypeStruct((B * S, V_pad), jnp.float32),
        grid_spec=pltpu.PrefetchScalarGridSpec(
            num_scalar_prefetch=0,
            grid=(B, L),                    # batch parallel, layers sequential
            in_specs=in_specs,
            out_specs=pl.BlockSpec((S, V_pad), lambda b, l: (b, 0)),
            scratch_shapes=[pltpu.VMEM((S, D), jnp.float32)],
        ),
        compiler_params=pltpu.CompilerParams(
            # Batch rows are independent -> "parallel" (uses v7x's 2nd TC);
            # layers carry the activation in scratch -> "arbitrary".
            dimension_semantics=("parallel", "arbitrary"),
            # Safe on all generations (v7x: 64 MiB physical; v5e/v6e: 128 MiB).
            # At realistic D/F/V, re-tile FFN/vocab and rebudget per chip.
            vmem_limit_bytes=48 * 1024 * 1024,
        ),
    )(x2d, mask, sel, *layer_args, params["w_out_t"], params["b_out"])
    return logits2d.reshape(B, S, V_pad)[:, :, :V]


# ----------------------------------------------------------------------------
# Deterministic parameter construction (mirrors the PyTorch module's shapes)
# ----------------------------------------------------------------------------
def init_params(key, d_model, ffn_hidden, num_heads, num_layers, vocab_size,
                vocab_pad):
    D, H, F = d_model, num_heads, ffn_hidden
    hd = D // H
    scale = 1.0 / math.sqrt(hd)
    keys = jax.random.split(key, 2 + num_layers)
    params = {"vocab_size": vocab_size}
    params["embedding"] = jax.random.normal(keys[0], (vocab_size, D),
                                            jnp.float32)  # nn.Embedding ~ N(0,1)

    # final nn.Linear(d_model, vocab_size), lane-padded to vocab_pad columns.
    k_out_w, k_out_b = jax.random.split(keys[1])
    w_out = 0.05 * jax.random.normal(k_out_w, (vocab_size, D), jnp.float32)
    b_out = 0.05 * jax.random.normal(k_out_b, (vocab_size,), jnp.float32)
    w_out_t = jnp.zeros((D, vocab_pad), jnp.float32).at[:, :vocab_size].set(
        jnp.transpose(w_out))
    b_out_p = jnp.zeros((1, vocab_pad), jnp.float32).at[:, :vocab_size].set(
        b_out[None, :])
    params["w_out_t"] = w_out_t.astype(jnp.bfloat16)
    params["b_out"] = b_out_p

    per_layer = []
    for li in range(num_layers):
        lk = jax.random.split(keys[2 + li], 8)
        # nn.Linear(d_model, 3*d_model): Wqkv (3D, D), bqkv (3D,)
        wqkv = 0.05 * jax.random.normal(lk[0], (3 * D, D), jnp.float32)
        bqkv = 0.05 * jax.random.normal(lk[1], (3 * D,), jnp.float32)
        # qkv.reshape(B,S,H,3hd).permute(0,2,1,3).chunk(3): head h's q-part uses
        # output rows [h*3hd, h*3hd+hd), k-part the next hd, v-part the last hd.
        wqkv_r = wqkv.reshape(H, 3, hd, D)          # [h, which, e, d_in]
        bqkv_r = bqkv.reshape(H, 3, hd)
        wq_h = jnp.transpose(wqkv_r[:, 0], (0, 2, 1))   # (H, D, hd) head-major
        wk_h = jnp.transpose(wqkv_r[:, 1], (0, 2, 1))
        wv_h = jnp.transpose(wqkv_r[:, 2], (0, 2, 1))
        bq_h = bqkv_r[:, 0][:, None, :]                 # (H, 1, hd)
        bk_h = bqkv_r[:, 1][:, None, :]
        bv_h = bqkv_r[:, 2][:, None, :]
        # nn.Linear(d_model, d_model) output projection, stored as row blocks.
        wo = 0.05 * jax.random.normal(lk[2], (D, D), jnp.float32)
        bo = 0.05 * jax.random.normal(lk[3], (D,), jnp.float32)
        wo_heads = jnp.transpose(wo).reshape(H, hd, D)  # (H, hd, D)
        w1 = 0.05 * jax.random.normal(lk[4], (F, D), jnp.float32)
        b1 = 0.05 * jax.random.normal(lk[5], (F,), jnp.float32)
        w2 = 0.05 * jax.random.normal(lk[6], (D, F), jnp.float32)
        b2 = 0.05 * jax.random.normal(lk[7], (D,), jnp.float32)
        per_layer.append({
            # 1/sqrt(head_dim) attention scale folded into the q projection.
            "wq": (wq_h * scale).astype(jnp.bfloat16),
            "bq": (bq_h * scale).astype(jnp.float32),
            "wk": wk_h.astype(jnp.bfloat16), "bk": bk_h.astype(jnp.float32),
            "wv": wv_h.astype(jnp.bfloat16), "bv": bv_h.astype(jnp.float32),
            "wo": wo_heads.astype(jnp.bfloat16), "bo": bo[None, :],
            "g1": jnp.ones((1, D), jnp.float32),
            "be1": jnp.zeros((1, D), jnp.float32),
            "w1": jnp.transpose(w1).astype(jnp.bfloat16), "b1": b1[None, :],
            "w2": jnp.transpose(w2).astype(jnp.bfloat16), "b2": b2[None, :],
            "g3": jnp.ones((1, D), jnp.float32),
            "be3": jnp.zeros((1, D), jnp.float32),
        })
    # Stack per-layer params along a leading L axis so the whole decoder can
    # run in one pallas_call with a layer grid axis.
    params["layers"] = {k: jnp.stack([p[k] for p in per_layer], axis=0)
                        for k in per_layer[0]}
    return params


# ----------------------------------------------------------------------------
# Pure-JAX reference (same precision policy; naive reshape for the scramble,
# so it cross-checks the in-kernel selection-matmul trick)
# ----------------------------------------------------------------------------
def transformer_forward_ref(input_tokens, params, d_model, num_heads):
    B, S = input_tokens.shape
    D = d_model
    H = num_heads
    V = params["vocab_size"]
    f32, bf16 = jnp.float32, jnp.bfloat16

    emb = params["embedding"][input_tokens]
    pe = positional_encoding(D, S)
    x = (emb + pe[None, :, :]).astype(f32)                     # (B, S, D)
    mask = causal_bias(S)

    lw = params["layers"]
    L = lw["wq"].shape[0]
    for li in range(L):
        xb = x.astype(bf16)
        qh = jnp.einsum("bsd,hde->bhse", xb, lw["wq"][li],
                        preferred_element_type=f32) + lw["bq"][li][None]
        kh = jnp.einsum("bsd,hde->bhse", xb, lw["wk"][li],
                        preferred_element_type=f32) + lw["bk"][li][None]
        vh = jnp.einsum("bsd,hde->bhse", xb, lw["wv"][li],
                        preferred_element_type=f32) + lw["bv"][li][None]
        s = jnp.einsum("bhqe,bhke->bhqk", qh.astype(bf16), kh.astype(bf16),
                       preferred_element_type=f32)
        s = s + mask[None, None]
        m = jnp.max(s, axis=-1, keepdims=True)
        p = jnp.exp(s - m)
        p = p / jnp.sum(p, axis=-1, keepdims=True)
        vals = jnp.einsum("bhqk,bhke->bhqe", p.astype(bf16), vh.astype(bf16),
                          preferred_element_type=f32)          # (B, H, S, hd)
        # PyTorch: values.reshape(B, S, H*hd) WITHOUT permute (flat reinterpret)
        scr = vals.reshape(B, S, D)
        wo_full = lw["wo"][li].reshape(D, D)
        attn = jnp.einsum("bsd,dn->bsn", scr.astype(bf16), wo_full,
                          preferred_element_type=f32) + lw["bo"][li]
        y = attn + x
        mu = jnp.mean(y, axis=-1, keepdims=True)
        var = jnp.mean(jnp.square(y - mu), axis=-1, keepdims=True)
        y1 = (y - mu) * lax.rsqrt(var + 1e-5) * lw["g1"][li] + lw["be1"][li]
        h1 = jnp.maximum(
            jnp.einsum("bsd,df->bsf", y1.astype(bf16), lw["w1"][li],
                       preferred_element_type=f32) + lw["b1"][li], 0.0)
        fo = jnp.einsum("bsf,fd->bsd", h1.astype(bf16), lw["w2"][li],
                        preferred_element_type=f32) + lw["b2"][li]
        y2 = fo + y1
        mu2 = jnp.mean(y2, axis=-1, keepdims=True)
        var2 = jnp.mean(jnp.square(y2 - mu2), axis=-1, keepdims=True)
        x = (y2 - mu2) * lax.rsqrt(var2 + 1e-5) * lw["g3"][li] + lw["be3"][li]
    logits = jnp.einsum("bsd,dv->bsv", x.astype(bf16), params["w_out_t"],
                        preferred_element_type=f32) + params["b_out"][None]
    return logits[:, :, :V]


# ----------------------------------------------------------------------------
if __name__ == "__main__":
    # Small configuration consistent with the module's constructor.
    d_model = 64
    ffn_hidden = 128
    num_heads = 4
    drop_prob = 0.1          # dropout is identity at inference
    num_layers = 2
    vocab_size = 64
    batch = 2
    seq = 8
    vocab_pad = 128          # lane-dense output stores (sliced back to V below)

    key = jax.random.PRNGKey(0)
    k_par, k_tok = jax.random.split(key)
    params = init_params(k_par, d_model, ffn_hidden, num_heads,
                         num_layers, vocab_size, vocab_pad)
    input_tokens = jax.random.randint(k_tok, (batch, seq), 0, vocab_size,
                                      dtype=jnp.int32)

    # TODO(synk): pad_mask path of scaled_dot_product not implemented
    # (module is run with pad_mask=None, atn_mask=True).
    logits = transformer_forward_pallas(input_tokens, params, d_model, num_heads)
    logits = jax.block_until_ready(logits)

    ref = transformer_forward_ref(input_tokens, params, d_model, num_heads)
    ref = jax.block_until_ready(ref)

    assert logits.shape == (batch, seq, vocab_size)
    if not jnp.allclose(logits, ref, atol=3e-3, rtol=3e-3):
        max_err = float(jnp.max(jnp.abs(logits - ref)))
        raise AssertionError(f"Pallas output mismatch vs reference, max_err={max_err}")

    print("KERNEL_OK")
</pallas_src>

<mosaic_0001>
module attributes {stable_mosaic.version = 11 : i64} {
  func.func @fused_transformer_kernel(%arg0: i32, %arg1: i32, %arg2: memref<8x64xf32, #tpu.memory_space<vmem>>, %arg3: memref<8x8xf32, #tpu.memory_space<vmem>>, %arg4: memref<32x32xbf16, #tpu.memory_space<vmem>>, %arg5: memref<1x4x64x16xbf16, #tpu.memory_space<vmem>>, %arg6: memref<1x4x1x16xf32, #tpu.memory_space<vmem>>, %arg7: memref<1x4x64x16xbf16, #tpu.memory_space<vmem>>, %arg8: memref<1x4x1x16xf32, #tpu.memory_space<vmem>>, %arg9: memref<1x4x64x16xbf16, #tpu.memory_space<vmem>>, %arg10: memref<1x4x1x16xf32, #tpu.memory_space<vmem>>, %arg11: memref<1x4x16x64xbf16, #tpu.memory_space<vmem>>, %arg12: memref<1x1x64xf32, #tpu.memory_space<vmem>>, %arg13: memref<1x1x64xf32, #tpu.memory_space<vmem>>, %arg14: memref<1x1x64xf32, #tpu.memory_space<vmem>>, %arg15: memref<1x64x128xbf16, #tpu.memory_space<vmem>>, %arg16: memref<1x1x128xf32, #tpu.memory_space<vmem>>, %arg17: memref<1x128x64xbf16, #tpu.memory_space<vmem>>, %arg18: memref<1x1x64xf32, #tpu.memory_space<vmem>>, %arg19: memref<1x1x64xf32, #tpu.memory_space<vmem>>, %arg20: memref<1x1x64xf32, #tpu.memory_space<vmem>>, %arg21: memref<64x128xbf16, #tpu.memory_space<vmem>>, %arg22: memref<1x128xf32, #tpu.memory_space<vmem>>, %arg23: memref<8x128xf32, #tpu.memory_space<vmem>>, %arg24: memref<8x64xf32, #tpu.memory_space<vmem>>) attributes {dimension_semantics = [#tpu.dimension_semantics<parallel>, #tpu.dimension_semantics<arbitrary>], iteration_bounds = array<i64: 2, 2>, scalar_prefetch = 0 : i64, scratch_operands = 1 : i64, tpu.core_type = #tpu.core_type<tc>, window_params = [{transform_indices = @transform_0, window_bounds = array<i64: 8, 64>}, {pipeline_mode = #tpu.pipeline_mode<synchronous>, transform_indices = @transform_1, window_bounds = array<i64: 8, 8>}, {pipeline_mode = #tpu.pipeline_mode<synchronous>, transform_indices = @transform_2, window_bounds = array<i64: 32, 32>}, {transform_indices = @transform_3, window_bounds = array<i64: 1, 4, 64, 16>}, {transform_indices = @transform_4, window_bounds = array<i64: 1, 4, 1, 16>}, {transform_indices = @transform_5, window_bounds = array<i64: 1, 4, 64, 16>}, {transform_indices = @transform_6, window_bounds = array<i64: 1, 4, 1, 16>}, {transform_indices = @transform_7, window_bounds = array<i64: 1, 4, 64, 16>}, {transform_indices = @transform_8, window_bounds = array<i64: 1, 4, 1, 16>}, {transform_indices = @transform_9, window_bounds = array<i64: 1, 4, 16, 64>}, {transform_indices = @transform_10, window_bounds = array<i64: 1, 1, 64>}, {transform_indices = @transform_11, window_bounds = array<i64: 1, 1, 64>}, {transform_indices = @transform_12, window_bounds = array<i64: 1, 1, 64>}, {transform_indices = @transform_13, window_bounds = array<i64: 1, 64, 128>}, {transform_indices = @transform_14, window_bounds = array<i64: 1, 1, 128>}, {transform_indices = @transform_15, window_bounds = array<i64: 1, 128, 64>}, {transform_indices = @transform_16, window_bounds = array<i64: 1, 1, 64>}, {transform_indices = @transform_17, window_bounds = array<i64: 1, 1, 64>}, {transform_indices = @transform_18, window_bounds = array<i64: 1, 1, 64>}, {pipeline_mode = #tpu.pipeline_mode<synchronous>, transform_indices = @transform_19, window_bounds = array<i64: 64, 128>}, {pipeline_mode = #tpu.pipeline_mode<synchronous>, transform_indices = @transform_20, window_bounds = array<i64: 1, 128>}, {transform_indices = @transform_21, window_bounds = array<i64: 8, 128>}]} {
    %c0_i32 = arith.constant 0 : i32
    %0 = arith.cmpi eq, %arg1, %c0_i32 : i32
    %c0 = arith.constant 0 : index
    %c0_0 = arith.constant 0 : index
    %1 = vector.load %arg2[%c0, %c0_0] : memref<8x64xf32, #tpu.memory_space<vmem>>, vector<8x64xf32>
    %c0_1 = arith.constant 0 : index
    %c0_2 = arith.constant 0 : index
    %2 = vector.load %arg24[%c0_1, %c0_2] : memref<8x64xf32, #tpu.memory_space<vmem>>, vector<8x64xf32>
    %3 = arith.select %0, %1, %2 : vector<8x64xf32>
    %4 = arith.truncf %3 : vector<8x64xf32> to vector<8x64xbf16>
    %5 = vector.shape_cast %4 : vector<8x64xbf16> to vector<1x8x64xbf16>
    %6 = vector.broadcast %5 : vector<1x8x64xbf16> to vector<4x8x64xbf16>
    %c0_3 = arith.constant 0 : index
    %c0_4 = arith.constant 0 : index
    %c0_5 = arith.constant 0 : index
    %c0_6 = arith.constant 0 : index
    %7 = vector.load %arg5[%c0_3, %c0_4, %c0_5, %c0_6] : memref<1x4x64x16xbf16, #tpu.memory_space<vmem>>, vector<1x4x64x16xbf16>
    %8 = vector.shape_cast %7 : vector<1x4x64x16xbf16> to vector<4x64x16xbf16>
    "tpu.trace_start"() <{level = 10 : i32, message = "hsd,hde->hse"}> : () -> ()
    %cst = arith.constant dense<0.000000e+00> : vector<4x8x16xf32>
    %9 = tpu.matmul %6, %8, %cst {dimension_numbers = #tpu.dot_dimension_numbers<[2], [1], [1], [2], [0, 0, 0, 1, 1, 2], [0], [0]>} : vector<4x8x64xbf16>, vector<4x64x16xbf16>, vector<4x8x16xf32> -> vector<4x8x16xf32>
    "tpu.trace_stop"() : () -> ()
    %c0_7 = arith.constant 0 : index
    %c0_8 = arith.constant 0 : index
    %c0_9 = arith.constant 0 : index
    %c0_10 = arith.constant 0 : index
    %10 = vector.load %arg6[%c0_7, %c0_8, %c0_9, %c0_10] : memref<1x4x1x16xf32, #tpu.memory_space<vmem>>, vector<1x4x1x16xf32>
    %11 = vector.shape_cast %10 : vector<1x4x1x16xf32> to vector<4x1x16xf32>
    %12 = vector.broadcast %11 : vector<4x1x16xf32> to vector<4x8x16xf32>
    %13 = arith.addf %9, %12 : vector<4x8x16xf32>
    %c0_11 = arith.constant 0 : index
    %c0_12 = arith.constant 0 : index
    %c0_13 = arith.constant 0 : index
    %c0_14 = arith.constant 0 : index
    %14 = vector.load %arg7[%c0_11, %c0_12, %c0_13, %c0_14] : memref<1x4x64x16xbf16, #tpu.memory_space<vmem>>, vector<1x4x64x16xbf16>
    %15 = vector.shape_cast %14 : vector<1x4x64x16xbf16> to vector<4x64x16xbf16>
    "tpu.trace_start"() <{level = 10 : i32, message = "hsd,hde->hse"}> : () -> ()
    %cst_15 = arith.constant dense<0.000000e+00> : vector<4x8x16xf32>
    %16 = tpu.matmul %6, %15, %cst_15 {dimension_numbers = #tpu.dot_dimension_numbers<[2], [1], [1], [2], [0, 0, 0, 1, 1, 2], [0], [0]>} : vector<4x8x64xbf16>, vector<4x64x16xbf16>, vector<4x8x16xf32> -> vector<4x8x16xf32>
    "tpu.trace_stop"() : () -> ()
    %c0_16 = arith.constant 0 : index
    %c0_17 = arith.constant 0 : index
    %c0_18 = arith.constant 0 : index
    %c0_19 = arith.constant 0 : index
    %17 = vector.load %arg8[%c0_16, %c0_17, %c0_18, %c0_19] : memref<1x4x1x16xf32, #tpu.memory_space<vmem>>, vector<1x4x1x16xf32>
    %18 = vector.shape_cast %17 : vector<1x4x1x16xf32> to vector<4x1x16xf32>
    %19 = vector.broadcast %18 : vector<4x1x16xf32> to vector<4x8x16xf32>
    %20 = arith.addf %16, %19 : vector<4x8x16xf32>
    %c0_20 = arith.constant 0 : index
    %c0_21 = arith.constant 0 : index
    %c0_22 = arith.constant 0 : index
    %c0_23 = arith.constant 0 : index
    %21 = vector.load %arg9[%c0_20, %c0_21, %c0_22, %c0_23] : memref<1x4x64x16xbf16, #tpu.memory_space<vmem>>, vector<1x4x64x16xbf16>
    %22 = vector.shape_cast %21 : vector<1x4x64x16xbf16> to vector<4x64x16xbf16>
    "tpu.trace_start"() <{level = 10 : i32, message = "hsd,hde->hse"}> : () -> ()
    %cst_24 = arith.constant dense<0.000000e+00> : vector<4x8x16xf32>
    %23 = tpu.matmul %6, %22, %cst_24 {dimension_numbers = #tpu.dot_dimension_numbers<[2], [1], [1], [2], [0, 0, 0, 1, 1, 2], [0], [0]>} : vector<4x8x64xbf16>, vector<4x64x16xbf16>, vector<4x8x16xf32> -> vector<4x8x16xf32>
    "tpu.trace_stop"() : () -> ()
    %c0_25 = arith.constant 0 : index
    %c0_26 = arith.constant 0 : index
    %c0_27 = arith.constant 0 : index
    %c0_28 = arith.constant 0 : index
    %24 = vector.load %arg10[%c0_25, %c0_26, %c0_27, %c0_28] : memref<1x4x1x16xf32, #tpu.memory_space<vmem>>, vector<1x4x1x16xf32>
    %25 = vector.shape_cast %24 : vector<1x4x1x16xf32> to vector<4x1x16xf32>
    %26 = vector.broadcast %25 : vector<4x1x16xf32> to vector<4x8x16xf32>
    %27 = arith.addf %23, %26 : vector<4x8x16xf32>
    %28 = arith.truncf %13 : vector<4x8x16xf32> to vector<4x8x16xbf16>
    %29 = arith.truncf %20 : vector<4x8x16xf32> to vector<4x8x16xbf16>
    "tpu.trace_start"() <{level = 10 : i32, message = "hqe,hke->hqk"}> : () -> ()
    %cst_29 = arith.constant dense<0.000000e+00> : vector<4x8x8xf32>
    %30 = tpu.matmul %28, %29, %cst_29 {dimension_numbers = #tpu.dot_dimension_numbers<[2], [2], [1], [1], [0, 0, 0, 1, 1, 1], [0], [0]>} : vector<4x8x16xbf16>, vector<4x8x16xbf16>, vector<4x8x8xf32> -> vector<4x8x8xf32>
    "tpu.trace_stop"() : () -> ()
    %c0_30 = arith.constant 0 : index
    %c0_31 = arith.constant 0 : index
    %31 = vector.load %arg3[%c0_30, %c0_31] : memref<8x8xf32, #tpu.memory_space<vmem>>, vector<8x8xf32>
    %32 = vector.shape_cast %31 : vector<8x8xf32> to vector<1x8x8xf32>
    %33 = vector.broadcast %32 : vector<1x8x8xf32> to vector<4x8x8xf32>
    %34 = arith.addf %30, %33 : vector<4x8x8xf32>
    %cst_32 = arith.constant dense<0xFF800000> : vector<4x8xf32>
    %35 = vector.multi_reduction <maximumf>, %34, %cst_32 [2] : vector<4x8x8xf32> to vector<4x8xf32>
    %36 = vector.shape_cast %35 : vector<4x8xf32> to vector<4x8x1xf32>
    %37 = vector.broadcast %36 : vector<4x8x1xf32> to vector<4x8x8xf32>
    %38 = arith.subf %34, %37 : vector<4x8x8xf32>
    %39 = math.exp %38 : vector<4x8x8xf32>
    %cst_33 = arith.constant dense<0.000000e+00> : vector<4x8xf32>
    %40 = vector.multi_reduction <add>, %39, %cst_33 [2] : vector<4x8x8xf32> to vector<4x8xf32>
    %41 = vector.shape_cast %40 : vector<4x8xf32> to vector<4x8x1xf32>
    %42 = tpu.reciprocal %41 {approx = true} : vector<4x8x1xf32> -> vector<4x8x1xf32>
    %43 = vector.broadcast %42 : vector<4x8x1xf32> to vector<4x8x8xf32>
    %44 = arith.mulf %39, %43 : vector<4x8x8xf32>
    %45 = arith.truncf %44 : vector<4x8x8xf32> to vector<4x8x8xbf16>
    %46 = arith.truncf %27 : vector<4x8x16xf32> to vector<4x8x16xbf16>
    "tpu.trace_start"() <{level = 10 : i32, message = "hqk,hke->hqe"}> : () -> ()
    %cst_34 = arith.constant dense<0.000000e+00> : vector<4x8x16xf32>
    %47 = tpu.matmul %45, %46, %cst_34 {dimension_numbers = #tpu.dot_dimension_numbers<[2], [1], [1], [2], [0, 0, 0, 1, 1, 2], [0], [0]>} : vector<4x8x8xbf16>, vector<4x8x16xbf16>, vector<4x8x16xf32> -> vector<4x8x16xf32>
    "tpu.trace_stop"() : () -> ()
    %48 = vector.shape_cast %47 : vector<4x8x16xf32> to vector<32x16xf32>
    %49 = arith.truncf %48 : vector<32x16xf32> to vector<32x16xbf16>
    %c0_35 = arith.constant 0 : index
    %c0_36 = arith.constant 0 : index
    %50 = vector.load %arg4[%c0_35, %c0_36] : memref<32x32xbf16, #tpu.memory_space<vmem>>, vector<32x32xbf16>
    %cst_37 = arith.constant dense<0.000000e+00> : vector<32x16xf32>
    %51 = tpu.matmul %50, %49, %cst_37 {dimension_numbers = #tpu.dot_dimension_numbers<[1], [0], [0], [1], [0, 0, 1, 1], [], []>} : vector<32x32xbf16>, vector<32x16xbf16>, vector<32x16xf32> -> vector<32x16xf32>
    %c0_38 = arith.constant 0 : index
    %c0_39 = arith.constant 0 : index
    %c0_40 = arith.constant 0 : index
    %c0_41 = arith.constant 0 : index
    %52 = vector.load %arg11[%c0_38, %c0_39, %c0_40, %c0_41] : memref<1x4x16x64xbf16, #tpu.memory_space<vmem>>, vector<1x4x16x64xbf16>
    %53 = vector.shape_cast %52 : vector<1x4x16x64xbf16> to vector<4x16x64xbf16>
    %c0_42 = arith.constant 0 : index
    %c0_43 = arith.constant 0 : index
    %c0_44 = arith.constant 0 : index
    %54 = vector.load %arg12[%c0_42, %c0_43, %c0_44] : memref<1x1x64xf32, #tpu.memory_space<vmem>>, vector<1x1x64xf32>
    %55 = vector.shape_cast %54 : vector<1x1x64xf32> to vector<1x64xf32>
    %56 = vector.extract_strided_slice %51 {offsets = [0, 0], sizes = [8, 16], strides = [1, 1]} : vector<32x16xf32> to vector<8x16xf32>
    %57 = arith.truncf %56 : vector<8x16xf32> to vector<8x16xbf16>
    %58 = vector.extract_strided_slice %53 {offsets = [0, 0, 0], sizes = [1, 16, 64], strides = [1, 1, 1]} : vector<4x16x64xbf16> to vector<1x16x64xbf16>
    %59 = vector.shape_cast %58 : vector<1x16x64xbf16> to vector<16x64xbf16>
    %cst_45 = arith.constant dense<0.000000e+00> : vector<8x64xf32>
    %60 = tpu.matmul %57, %59, %cst_45 {dimension_numbers = #tpu.dot_dimension_numbers<[1], [0], [0], [1], [0, 0, 1, 1], [], []>} : vector<8x16xbf16>, vector<16x64xbf16>, vector<8x64xf32> -> vector<8x64xf32>
    %61 = vector.broadcast %55 : vector<1x64xf32> to vector<8x64xf32>
    %62 = arith.addf %61, %60 : vector<8x64xf32>
    %63 = vector.extract_strided_slice %51 {offsets = [8, 0], sizes = [8, 16], strides = [1, 1]} : vector<32x16xf32> to vector<8x16xf32>
    %64 = arith.truncf %63 : vector<8x16xf32> to vector<8x16xbf16>
    %65 = vector.extract_strided_slice %53 {offsets = [1, 0, 0], sizes = [1, 16, 64], strides = [1, 1, 1]} : vector<4x16x64xbf16> to vector<1x16x64xbf16>
    %66 = vector.shape_cast %65 : vector<1x16x64xbf16> to vector<16x64xbf16>
    %cst_46 = arith.constant dense<0.000000e+00> : vector<8x64xf32>
    %67 = tpu.matmul %64, %66, %cst_46 {dimension_numbers = #tpu.dot_dimension_numbers<[1], [0], [0], [1], [0, 0, 1, 1], [], []>} : vector<8x16xbf16>, vector<16x64xbf16>, vector<8x64xf32> -> vector<8x64xf32>
    %68 = arith.addf %62, %67 : vector<8x64xf32>
    %69 = vector.extract_strided_slice %51 {offsets = [16, 0], sizes = [8, 16], strides = [1, 1]} : vector<32x16xf32> to vector<8x16xf32>
    %70 = arith.truncf %69 : vector<8x16xf32> to vector<8x16xbf16>
    %71 = vector.extract_strided_slice %53 {offsets = [2, 0, 0], sizes = [1, 16, 64], strides = [1, 1, 1]} : vector<4x16x64xbf16> to vector<1x16x64xbf16>
    %72 = vector.shape_cast %71 : vector<1x16x64xbf16> to vector<16x64xbf16>
    %cst_47 = arith.constant dense<0.000000e+00> : vector<8x64xf32>
    %73 = tpu.matmul %70, %72, %cst_47 {dimension_numbers = #tpu.dot_dimension_numbers<[1], [0], [0], [1], [0, 0, 1, 1], [], []>} : vector<8x16xbf16>, vector<16x64xbf16>, vector<8x64xf32> -> vector<8x64xf32>
    %74 = arith.addf %68, %73 : vector<8x64xf32>
    %75 = vector.extract_strided_slice %51 {offsets = [24, 0], sizes = [8, 16], strides = [1, 1]} : vector<32x16xf32> to vector<8x16xf32>
    %76 = arith.truncf %75 : vector<8x16xf32> to vector<8x16xbf16>
    %77 = vector.extract_strided_slice %53 {offsets = [3, 0, 0], sizes = [1, 16, 64], strides = [1, 1, 1]} : vector<4x16x64xbf16> to vector<1x16x64xbf16>
    %78 = vector.shape_cast %77 : vector<1x16x64xbf16> to vector<16x64xbf16>
    %cst_48 = arith.constant dense<0.000000e+00> : vector<8x64xf32>
    %79 = tpu.matmul %76, %78, %cst_48 {dimension_numbers = #tpu.dot_dimension_numbers<[1], [0], [0], [1], [0, 0, 1, 1], [], []>} : vector<8x16xbf16>, vector<16x64xbf16>, vector<8x64xf32> -> vector<8x64xf32>
    %80 = arith.addf %74, %79 : vector<8x64xf32>
    %81 = arith.addf %80, %3 : vector<8x64xf32>
    %cst_49 = arith.constant dense<0.000000e+00> : vector<8xf32>
    %82 = vector.multi_reduction <add>, %81, %cst_49 [1] : vector<8x64xf32> to vector<8xf32>
    %83 = vector.shape_cast %82 : vector<8xf32> to vector<8x1xf32>
    %cst_50 = arith.constant 6.400000e+01 : f32
    %84 = vector.broadcast %cst_50 : f32 to vector<8x1xf32>
    %85 = arith.divf %83, %84 : vector<8x1xf32>
    %86 = vector.broadcast %85 : vector<8x1xf32> to vector<8x64xf32>
    %87 = arith.subf %81, %86 : vector<8x64xf32>
    %88 = arith.mulf %87, %87 : vector<8x64xf32>
    %cst_51 = arith.constant dense<0.000000e+00> : vector<8xf32>
    %89 = vector.multi_reduction <add>, %88, %cst_51 [1] : vector<8x64xf32> to vector<8xf32>
    %90 = vector.shape_cast %89 : vector<8xf32> to vector<8x1xf32>
    %cst_52 = arith.constant 6.400000e+01 : f32
    %91 = vector.broadcast %cst_52 : f32 to vector<8x1xf32>
    %92 = arith.divf %90, %91 : vector<8x1xf32>
    %93 = vector.broadcast %85 : vector<8x1xf32> to vector<8x64xf32>
    %94 = arith.subf %81, %93 : vector<8x64xf32>
    %cst_53 = arith.constant 9.99999974E-6 : f32
    %95 = vector.broadcast %cst_53 : f32 to vector<8x1xf32>
    %96 = arith.addf %92, %95 : vector<8x1xf32>
    %97 = math.rsqrt %96 : vector<8x1xf32>
    %98 = vector.broadcast %97 : vector<8x1xf32> to vector<8x64xf32>
    %99 = arith.mulf %94, %98 : vector<8x64xf32>
    %c0_54 = arith.constant 0 : index
    %c0_55 = arith.constant 0 : index
    %c0_56 = arith.constant 0 : index
    %100 = vector.load %arg13[%c0_54, %c0_55, %c0_56] : memref<1x1x64xf32, #tpu.memory_space<vmem>>, vector<1x1x64xf32>
    %101 = vector.shape_cast %100 : vector<1x1x64xf32> to vector<1x64xf32>
    %102 = vector.broadcast %101 : vector<1x64xf32> to vector<8x64xf32>
    %103 = arith.mulf %99, %102 : vector<8x64xf32>
    %c0_57 = arith.constant 0 : index
    %c0_58 = arith.constant 0 : index
    %c0_59 = arith.constant 0 : index
    %104 = vector.load %arg14[%c0_57, %c0_58, %c0_59] : memref<1x1x64xf32, #tpu.memory_space<vmem>>, vector<1x1x64xf32>
    %105 = vector.shape_cast %104 : vector<1x1x64xf32> to vector<1x64xf32>
    %106 = vector.broadcast %105 : vector<1x64xf32> to vector<8x64xf32>
    %107 = arith.addf %103, %106 : vector<8x64xf32>
    %108 = arith.truncf %107 : vector<8x64xf32> to vector<8x64xbf16>
    %c0_60 = arith.constant 0 : index
    %c0_61 = arith.constant 0 : index
    %c0_62 = arith.constant 0 : index
    %109 = vector.load %arg15[%c0_60, %c0_61, %c0_62] : memref<1x64x128xbf16, #tpu.memory_space<vmem>>, vector<1x64x128xbf16>
    %110 = vector.shape_cast %109 : vector<1x64x128xbf16> to vector<64x128xbf16>
    %cst_63 = arith.constant dense<0.000000e+00> : vector<8x128xf32>
    %111 = tpu.matmul %108, %110, %cst_63 {dimension_numbers = #tpu.dot_dimension_numbers<[1], [0], [0], [1], [0, 0, 1, 1], [], []>} : vector<8x64xbf16>, vector<64x128xbf16>, vector<8x128xf32> -> vector<8x128xf32>
    %c0_64 = arith.constant 0 : index
    %c0_65 = arith.constant 0 : index
    %c0_66 = arith.constant 0 : index
    %112 = vector.load %arg16[%c0_64, %c0_65, %c0_66] : memref<1x1x128xf32, #tpu.memory_space<vmem>>, vector<1x1x128xf32>
    %113 = vector.shape_cast %112 : vector<1x1x128xf32> to vector<1x128xf32>
    %114 = vector.broadcast %113 : vector<1x128xf32> to vector<8x128xf32>
    %115 = arith.addf %111, %114 : vector<8x128xf32>
    %cst_67 = arith.constant 0.000000e+00 : f32
    %116 = vector.broadcast %cst_67 : f32 to vector<8x128xf32>
    %117 = arith.maximumf %115, %116 : vector<8x128xf32>
    %118 = arith.truncf %117 : vector<8x128xf32> to vector<8x128xbf16>
    %c0_68 = arith.constant 0 : index
    %c0_69 = arith.constant 0 : index
    %c0_70 = arith.constant 0 : index
    %119 = vector.load %arg17[%c0_68, %c0_69, %c0_70] : memref<1x128x64xbf16, #tpu.memory_space<vmem>>, vector<1x128x64xbf16>
    %120 = vector.shape_cast %119 : vector<1x128x64xbf16> to vector<128x64xbf16>
    %cst_71 = arith.constant dense<0.000000e+00> : vector<8x64xf32>
    %121 = tpu.matmul %118, %120, %cst_71 {dimension_numbers = #tpu.dot_dimension_numbers<[1], [0], [0], [1], [0, 0, 1, 1], [], []>} : vector<8x128xbf16>, vector<128x64xbf16>, vector<8x64xf32> -> vector<8x64xf32>
    %c0_72 = arith.constant 0 : index
    %c0_73 = arith.constant 0 : index
    %c0_74 = arith.constant 0 : index
    %122 = vector.load %arg18[%c0_72, %c0_73, %c0_74] : memref<1x1x64xf32, #tpu.memory_space<vmem>>, vector<1x1x64xf32>
    %123 = vector.shape_cast %122 : vector<1x1x64xf32> to vector<1x64xf32>
    %124 = vector.broadcast %123 : vector<1x64xf32> to vector<8x64xf32>
    %125 = arith.addf %121, %124 : vector<8x64xf32>
    %126 = arith.addf %125, %107 : vector<8x64xf32>
    %cst_75 = arith.constant dense<0.000000e+00> : vector<8xf32>
    %127 = vector.multi_reduction <add>, %126, %cst_75 [1] : vector<8x64xf32> to vector<8xf32>
    %128 = vector.shape_cast %127 : vector<8xf32> to vector<8x1xf32>
    %cst_76 = arith.constant 6.400000e+01 : f32
    %129 = vector.broadcast %cst_76 : f32 to vector<8x1xf32>
    %130 = arith.divf %128, %129 : vector<8x1xf32>
    %131 = vector.broadcast %130 : vector<8x1xf32> to vector<8x64xf32>
    %132 = arith.subf %126, %131 : vector<8x64xf32>
    %133 = arith.mulf %132, %132 : vector<8x64xf32>
    %cst_77 = arith.constant dense<0.000000e+00> : vector<8xf32>
    %134 = vector.multi_reduction <add>, %133, %cst_77 [1] : vector<8x64xf32> to vector<8xf32>
    %135 = vector.shape_cast %134 : vector<8xf32> to vector<8x1xf32>
    %cst_78 = arith.constant 6.400000e+01 : f32
    %136 = vector.broadcast %cst_78 : f32 to vector<8x1xf32>
    %137 = arith.divf %135, %136 : vector<8x1xf32>
    %138 = vector.broadcast %130 : vector<8x1xf32> to vector<8x64xf32>
    %139 = arith.subf %126, %138 : vector<8x64xf32>
    %cst_79 = arith.constant 9.99999974E-6 : f32
    %140 = vector.broadcast %cst_79 : f32 to vector<8x1xf32>
    %141 = arith.addf %137, %140 : vector<8x1xf32>
    %142 = math.rsqrt %141 : vector<8x1xf32>
    %143 = vector.broadcast %142 : vector<8x1xf32> to vector<8x64xf32>
    %144 = arith.mulf %139, %143 : vector<8x64xf32>
    %c0_80 = arith.constant 0 : index
    %c0_81 = arith.constant 0 : index
    %c0_82 = arith.constant 0 : index
    %145 = vector.load %arg19[%c0_80, %c0_81, %c0_82] : memref<1x1x64xf32, #tpu.memory_space<vmem>>, vector<1x1x64xf32>
    %146 = vector.shape_cast %145 : vector<1x1x64xf32> to vector<1x64xf32>
    %147 = vector.broadcast %146 : vector<1x64xf32> to vector<8x64xf32>
    %148 = arith.mulf %144, %147 : vector<8x64xf32>
    %c0_83 = arith.constant 0 : index
    %c0_84 = arith.constant 0 : index
    %c0_85 = arith.constant 0 : index
    %149 = vector.load %arg20[%c0_83, %c0_84, %c0_85] : memref<1x1x64xf32, #tpu.memory_space<vmem>>, vector<1x1x64xf32>
    %150 = vector.shape_cast %149 : vector<1x1x64xf32> to vector<1x64xf32>
    %151 = vector.broadcast %150 : vector<1x64xf32> to vector<8x64xf32>
    %152 = arith.addf %148, %151 : vector<8x64xf32>
    %c1_i32 = arith.constant 1 : i32
    %153 = arith.cmpi slt, %arg1, %c1_i32 : i32
    %154 = arith.extui %153 : i1 to i32
    %c0_i32_86 = arith.constant 0 : i32
    %155 = arith.cmpi ne, %154, %c0_i32_86 : i32
    scf.if %155 {
      %c0_89 = arith.constant 0 : index
      %c0_90 = arith.constant 0 : index
      %159 = vector.load %arg24[%c0_89, %c0_90] : memref<8x64xf32, #tpu.memory_space<vmem>>, vector<8x64xf32>
      tpu.vector_store %arg24[%c0_89, %c0_90], %152 {strides = array<i32>} : memref<8x64xf32, #tpu.memory_space<vmem>>, vector<8x64xf32>,
    } else {
    }
    %c1_i32_87 = arith.constant 1 : i32
    %156 = arith.cmpi eq, %arg1, %c1_i32_87 : i32
    %157 = arith.extui %156 : i1 to i32
    %c0_i32_88 = arith.constant 0 : i32
    %158 = arith.cmpi ne, %157, %c0_i32_88 : i32
    scf.if %158 {
      %159 = arith.truncf %152 : vector<8x64xf32> to vector<8x64xbf16>
      %c0_89 = arith.constant 0 : index
      %c0_90 = arith.constant 0 : index
      %160 = vector.load %arg21[%c0_89, %c0_90] : memref<64x128xbf16, #tpu.memory_space<vmem>>, vector<64x128xbf16>
      %cst_91 = arith.constant dense<0.000000e+00> : vector<8x128xf32>
      %161 = tpu.matmul %159, %160, %cst_91 {dimension_numbers = #tpu.dot_dimension_numbers<[1], [0], [0], [1], [0, 0, 1, 1], [], []>} : vector<8x64xbf16>, vector<64x128xbf16>, vector<8x128xf32> -> vector<8x128xf32>
      %c0_92 = arith.constant 0 : index
      %c0_93 = arith.constant 0 : index
      %162 = vector.load %arg22[%c0_92, %c0_93] : memref<1x128xf32, #tpu.memory_space<vmem>>, vector<1x128xf32>
      %163 = vector.broadcast %162 : vector<1x128xf32> to vector<8x128xf32>
      %164 = arith.addf %161, %163 : vector<8x128xf32>
      %c0_94 = arith.constant 0 : index
      %c0_95 = arith.constant 0 : index
      %165 = vector.load %arg23[%c0_94, %c0_95] : memref<8x128xf32, #tpu.memory_space<vmem>>, vector<8x128xf32>
      tpu.vector_store %arg23[%c0_94, %c0_95], %164 {strides = array<i32>} : memref<8x128xf32, #tpu.memory_space<vmem>>, vector<8x128xf32>,
    } else {
    }
    return
  }
  func.func @transform_0(%arg0: i32, %arg1: i32) -> (i32, i32) {
    %c0_i32 = arith.constant 0 : i32
    %c0_i32_0 = arith.constant 0 : i32
    return %arg0, %c0_i32 : i32, i32
  }
  func.func @transform_1(%arg0: i32, %arg1: i32) -> (i32, i32) {
    %c0_i32 = arith.constant 0 : i32
    %c0_i32_0 = arith.constant 0 : i32
    %c0_i32_1 = arith.constant 0 : i32
    return %c0_i32, %c0_i32_0 : i32, i32
  }
  func.func @transform_2(%arg0: i32, %arg1: i32) -> (i32, i32) {
    %c0_i32 = arith.constant 0 : i32
    %c0_i32_0 = arith.constant 0 : i32
    %c0_i32_1 = arith.constant 0 : i32
    return %c0_i32, %c0_i32_0 : i32, i32
  }
  func.func @transform_3(%arg0: i32, %arg1: i32) -> (i32, i32, i32, i32) {
    %c0_i32 = arith.constant 0 : i32
    %c0_i32_0 = arith.constant 0 : i32
    %c0_i32_1 = arith.constant 0 : i32
    %c0_i32_2 = arith.constant 0 : i32
    return %arg1, %c0_i32, %c0_i32_0, %c0_i32_1 : i32, i32, i32, i32
  }
  func.func @transform_4(%arg0: i32, %arg1: i32) -> (i32, i32, i32, i32) {
    %c0_i32 = arith.constant 0 : i32
    %c0_i32_0 = arith.constant 0 : i32
    %c0_i32_1 = arith.constant 0 : i32
    %c0_i32_2 = arith.constant 0 : i32
    return %arg1, %c0_i32, %c0_i32_0, %c0_i32_1 : i32, i32, i32, i32
  }
  func.func @transform_5(%arg0: i32, %arg1: i32) -> (i32, i32, i32, i32) {
    %c0_i32 = arith.constant 0 : i32
    %c0_i32_0 = arith.constant 0 : i32
    %c0_i32_1 = arith.constant 0 : i32
    %c0_i32_2 = arith.constant 0 : i32
    return %arg1, %c0_i32, %c0_i32_0, %c0_i32_1 : i32, i32, i32, i32
  }
  func.func @transform_6(%arg0: i32, %arg1: i32) -> (i32, i32, i32, i32) {
    %c0_i32 = arith.constant 0 : i32
    %c0_i32_0 = arith.constant 0 : i32
    %c0_i32_1 = arith.constant 0 : i32
    %c0_i32_2 = arith.constant 0 : i32
    return %arg1, %c0_i32, %c0_i32_0, %c0_i32_1 : i32, i32, i32, i32
  }
  func.func @transform_7(%arg0: i32, %arg1: i32) -> (i32, i32, i32, i32) {
    %c0_i32 = arith.constant 0 : i32
    %c0_i32_0 = arith.constant 0 : i32
    %c0_i32_1 = arith.constant 0 : i32
    %c0_i32_2 = arith.constant 0 : i32
    return %arg1, %c0_i32, %c0_i32_0, %c0_i32_1 : i32, i32, i32, i32
  }
  func.func @transform_8(%arg0: i32, %arg1: i32) -> (i32, i32, i32, i32) {
    %c0_i32 = arith.constant 0 : i32
    %c0_i32_0 = arith.constant 0 : i32
    %c0_i32_1 = arith.constant 0 : i32
    %c0_i32_2 = arith.constant 0 : i32
    return %arg1, %c0_i32, %c0_i32_0, %c0_i32_1 : i32, i32, i32, i32
  }
  func.func @transform_9(%arg0: i32, %arg1: i32) -> (i32, i32, i32, i32) {
    %c0_i32 = arith.constant 0 : i32
    %c0_i32_0 = arith.constant 0 : i32
    %c0_i32_1 = arith.constant 0 : i32
    %c0_i32_2 = arith.constant 0 : i32
    return %arg1, %c0_i32, %c0_i32_0, %c0_i32_1 : i32, i32, i32, i32
  }
  func.func @transform_10(%arg0: i32, %arg1: i32) -> (i32, i32, i32) {
    %c0_i32 = arith.constant 0 : i32
    %c0_i32_0 = arith.constant 0 : i32
    %c0_i32_1 = arith.constant 0 : i32
    return %arg1, %c0_i32, %c0_i32_0 : i32, i32, i32
  }
  func.func @transform_11(%arg0: i32, %arg1: i32) -> (i32, i32, i32) {
    %c0_i32 = arith.constant 0 : i32
    %c0_i32_0 = arith.constant 0 : i32
    %c0_i32_1 = arith.constant 0 : i32
    return %arg1, %c0_i32, %c0_i32_0 : i32, i32, i32
  }
  func.func @transform_12(%arg0: i32, %arg1: i32) -> (i32, i32, i32) {
    %c0_i32 = arith.constant 0 : i32
    %c0_i32_0 = arith.constant 0 : i32
    %c0_i32_1 = arith.constant 0 : i32
    return %arg1, %c0_i32, %c0_i32_0 : i32, i32, i32
  }
  func.func @transform_13(%arg0: i32, %arg1: i32) -> (i32, i32, i32) {
    %c0_i32 = arith.constant 0 : i32
    %c0_i32_0 = arith.constant 0 : i32
    %c0_i32_1 = arith.constant 0 : i32
    return %arg1, %c0_i32, %c0_i32_0 : i32, i32, i32
  }
  func.func @transform_14(%arg0: i32, %arg1: i32) -> (i32, i32, i32) {
    %c0_i32 = arith.constant 0 : i32
    %c0_i32_0 = arith.constant 0 : i32
    %c0_i32_1 = arith.constant 0 : i32
    return %arg1, %c0_i32, %c0_i32_0 : i32, i32, i32
  }
  func.func @transform_15(%arg0: i32, %arg1: i32) -> (i32, i32, i32) {
    %c0_i32 = arith.constant 0 : i32
    %c0_i32_0 = arith.constant 0 : i32
    %c0_i32_1 = arith.constant 0 : i32
    return %arg1, %c0_i32, %c0_i32_0 : i32, i32, i32
  }
  func.func @transform_16(%arg0: i32, %arg1: i32) -> (i32, i32, i32) {
    %c0_i32 = arith.constant 0 : i32
    %c0_i32_0 = arith.constant 0 : i32
    %c0_i32_1 = arith.constant 0 : i32
    return %arg1, %c0_i32, %c0_i32_0 : i32, i32, i32
  }
  func.func @transform_17(%arg0: i32, %arg1: i32) -> (i32, i32, i32) {
    %c0_i32 = arith.constant 0 : i32
    %c0_i32_0 = arith.constant 0 : i32
    %c0_i32_1 = arith.constant 0 : i32
    return %arg1, %c0_i32, %c0_i32_0 : i32, i32, i32
  }
  func.func @transform_18(%arg0: i32, %arg1: i32) -> (i32, i32, i32) {
    %c0_i32 = arith.constant 0 : i32
    %c0_i32_0 = arith.constant 0 : i32
    %c0_i32_1 = arith.constant 0 : i32
    return %arg1, %c0_i32, %c0_i32_0 : i32, i32, i32
  }
  func.func @transform_19(%arg0: i32, %arg1: i32) -> (i32, i32) {
    %c0_i32 = arith.constant 0 : i32
    %c0_i32_0 = arith.constant 0 : i32
    %c0_i32_1 = arith.constant 0 : i32
    return %c0_i32, %c0_i32_0 : i32, i32
  }
  func.func @transform_20(%arg0: i32, %arg1: i32) -> (i32, i32) {
    %c0_i32 = arith.constant 0 : i32
    %c0_i32_0 = arith.constant 0 : i32
    %c0_i32_1 = arith.constant 0 : i32
    return %c0_i32, %c0_i32_0 : i32, i32
  }
  func.func @transform_21(%arg0: i32, %arg1: i32) -> (i32, i32) {
    %c0_i32 = arith.constant 0 : i32
    %c0_i32_0 = arith.constant 0 : i32
    return %arg0, %c0_i32 : i32, i32
  }
}

</mosaic_0001>

<bundles_post_ra>
// kernel: tpu_custom_call.1
= control target key start
LH: loop header
LB: loop body
LE: loop exit
PB: predicated region body
PF: predicated region fallthrough
CT: control target
= control target key end

     0   :  { %s4652_s0 = inlined_call_operand.vmem [shape: f32[16,64], index: 0, kind: input, shape index: {}]   ;;  %s4653_s1 = inlined_call_operand.vmem [shape: f32[8,8], index: 1, kind: input, shape index: {}]   ;;  %s4654_s2 = inlined_call_operand.vmem [shape: bf16[32,32], index: 2, kind: input, shape index: {}]   ;;  %s4655_s3 = inlined_call_operand.vmem [shape: bf16[2,4,64,16], index: 3, kind: input, shape index: {}]   ;;  %s4656_s4 = inlined_call_operand.vmem [shape: f32[2,4,1,16], index: 4, kind: input, shape index: {}]   ;;  %s4657_s5 = inlined_call_operand.vmem [shape: bf16[2,4,64,16], index: 5, kind: input, shape index: {}]   ;;  %s4658_s6 = inlined_call_operand.vmem [shape: f32[2,4,1,16], index: 6, kind: input, shape index: {}]   ;;  %s4659_s7 = inlined_call_operand.vmem [shape: bf16[2,4,64,16], index: 7, kind: input, shape index: {}]   ;;  %s4660_s8 = inlined_call_operand.vmem [shape: f32[2,4,1,16], index: 8, kind: input, shape index: {}]   ;;  %s4661_s9 = inlined_call_operand.vmem [shape: bf16[2,4,16,64], index: 9, kind: input, shape index: {}]   ;;  %s4662_s10 = inlined_call_operand.vmem [shape: f32[2,1,64], index: 10, kind: input, shape index: {}]   ;;  %s4663_s11 = inlined_call_operand.vmem [shape: f32[2,1,64], index: 11, kind: input, shape index: {}]   ;;  %s4664_s12 = inlined_call_operand.vmem [shape: f32[2,1,64], index: 12, kind: input, shape index: {}]   ;;  %s4665_s13 = inlined_call_operand.vmem [shape: bf16[2,64,128], index: 13, kind: input, shape index: {}]   ;;  %s4666_s14 = inlined_call_operand.vmem [shape: f32[2,1,128], index: 14, kind: input, shape index: {}]   ;;  %s4667_s15 = inlined_call_operand.vmem [shape: bf16[2,128,64], index: 15, kind: input, shape index: {}]   ;;  %s4668_s16 = inlined_call_operand.vmem [shape: f32[2,1,64], index: 16, kind: input, shape index: {}]   ;;  %s4669_s17 = inlined_call_operand.vmem [shape: f32[2,1,64], index: 17, kind: input, shape index: {}]   ;;  %s4670_s18 = inlined_call_operand.vmem [shape: f32[2,1,64], index: 18, kind: input, shape index: {}]   ;;  %s4671_s19 = inlined_call_operand.vmem [shape: bf16[64,128], index: 19, kind: input, shape index: {}]   ;;  %s4672_s20 = inlined_call_operand.vmem [shape: f32[1,128], index: 20, kind: input, shape index: {}]   ;;  %s4673_s21 = inlined_call_operand.hbm [shape: f32[16,128], index: 21, kind: output, shape index: {}]  }
   0x1   :  { %4688 = sst [smem:[#allocation17_spill]] %s4652_s0 }
   0x2   :  { %4689 = sst [smem:[#allocation18_spill]] %s4653_s1 }
   0x3   :  { %4690 = sst [smem:[#allocation19_spill]] %s4654_s2 }
   0x4   :  { %4691 = sst [smem:[#allocation20_spill]] %s4655_s3 }
   0x5   :  { %4692 = sst [smem:[#allocation21_spill]] %s4656_s4 }
   0x6   :  { %4693 = sst [smem:[#allocation22_spill]] %s4657_s5 }
   0x7   :  { %4694 = sst [smem:[#allocation23_spill]] %s4658_s6 }
   0x8   :  { %4695 = sst [smem:[#allocation24_spill]] %s4659_s7 }
   0x9   :  { %4696 = sst [smem:[#allocation25_spill]] %s4660_s8 }
   0xa   :  { %4697 = sst [smem:[#allocation26_spill]] %s4673_s21 }
   0xb   :  { %26 = vsyncpa [#allocation4], 0 }
   0xc   :  { %28 = vsyncpa [#allocation4 + $0x1], 0  ;;  %s4125_s2 = smov 0   ;;  %s4127_s25 = smov 0  }
   0xd   :  { %s4129_s26 = smov 0   ;;  %s4131_s27 = smov 0  }
   0xe   :  { %s4133_s3 = smov 0   ;;  %s4135_s28 = smov 0  }
   0xf   :  { %s4137_s29 = smov 0   ;;  %s4139_s0 = smov 0  }
  0x10 LB: > { %4698 = sst [smem:[#allocation6_spill]] %s3980_s2  ;;  %s3222_s4 = sadd.s32 4294967295, %s4008_s0   ;;  %s4008_s0 = sphi %s4139_s0, %s34_s0   ;;  %s4004_s29 = sphi %s4137_s29, %s4734_s29   ;;  %s4000_s28 = sphi %s4135_s28, %s4733_s28   ;;  %s3996_s3 = sphi %s4133_s3, %s4732_s3   ;;  %s3992_s27 = sphi %s4131_s27, %s4731_s27   ;;  %s3988_s26 = sphi %s4129_s26, %s4730_s26   ;;  %s3984_s25 = sphi %s4127_s25, %s4729_s25   ;;  %s3980_s2 = sphi %s4125_s2, %s4728_s2  }
  0x11   : > { %4699 = sst [smem:[#allocation7_spill]] %s3984_s25  ;;  %s3223_s30 = sadd.s32 4294967294, %s4008_s0  }
  0x12   : > { %4700 = sst [smem:[#allocation8_spill]] %s3988_s26  ;;  %s43_s5 = sadd.s32 1, %s4000_s28 }
  0x13   : > { %4701 = sst [smem:[#allocation9_spill]] %s4000_s28  ;;  %p44_p0 = scmp.ge.s32.totalorder %s43_s5, 2 }
  0x14   : > { %4702 = sst [smem:[#allocation10_spill]] %s4004_s29  ;;  %s46_s22 = sadd.s32 1, %s4004_s29 }
  0x15   : > { %4703 = sst [smem:[#allocation11_spill]] %s4008_s0  ;;  %p589_p1 = scmp.ne.s32.totalorder %s3988_s26, %s3984_s25 }
  0x16   : > { %p590_p2 = scmp.eq.s32.totalorder %s3222_s4, 3  ;;  %s4736_s5 = smov (%p44_p0, %s43_s5), 0 }
  0x17   : > { %4704 = sst [smem:[#allocation12_spill]] %s4736_s5  ;;  %s4738_s22 = smov (!%p44_p0, %s46_s22), %s4004_s29 }
  0x18   : > { %p4174_p3 = por %p590_p2, %p589_p1  ;;  %p595_p4 = scmp.ne.s32.totalorder %s3984_s25, %s3980_s2 }
  0x19   : > { %p48_p5 = scmp.ge.s32.totalorder %s4738_s22, 2  ;;  %p596_p6 = scmp.eq.s32.totalorder %s3223_s30, 3 }
  0x1a   : > { %s4705_s23 = scalar_select %p4174_p3, 1, 0 }
  0x1b   : > { %p3226_p7 = scmp.ge.s32.totalorder %s4008_s0, 1  ;;  %p744_p8 = scmp.lt.s32.totalorder %s4008_s0, 5 }
  0x1c   : > { %4706 = sst [smem:[#allocation13_spill]] %s4705_s23  ;;  %s4740_s22 = smov (%p48_p5, %s4738_s22), 0 }
  0x1d   : > { %4707 = sst [smem:[#allocation14_spill]] %s4740_s22  ;;  %p4184_p9 = por %p596_p6, %p595_p4 }
  0x1e   : > { %p745_p10 = pnand %p3226_p7, %p744_p8  ;;  %s576_s24 = ssub.s32 %s4004_s29, %s4740_s22 }
  0x1f   : > { %s4708_s1 = scalar_select %p4184_p9, 1, 0 }
  0x20   : > { %s579_s4 = sadd.s32 1, %s3988_s26  ;;  %p577_p11 = scmp.eq.s32.totalorder %s576_s24, 0  ;;  %v4010_v0 = vmov (!%p745_p10), 0.0   ;;  %vm4011_vm0 = vmmov (!%p745_p10), 0   ;;  %v936_v8 = vld [vmem:[#allocation2] sm:$0xff] (!%p745_p10)  ;;  %vm1026_vm2 = vcmask (!%p745_p10), 523264  }
  0x21   : > { %4709 = sst [smem:[#allocation15_spill]] %s4708_s1  ;;  %748 = sbr.rel (%p745_p10) target bundleno = 2859 (0xb2b), region = 104  ;;  %3481 = vmatprep.subr.bf16.mxu1 (!%p745_p10), %v4010_v0  ;;  %3505 = vmatprep.subr.bf16.mxu0 (!%p745_p10), %v4010_v0  ;;  %vm1903_vm3 = vcmask (!%p745_p10), 130048   ;;  %vm2144_vm4 = vcmask (!%p745_p10), 1043456   ;;  %vm2088_vm5 = vcmask (!%p745_p10), 64512   ;;  %vm2342_vm6 = vcmask (!%p745_p10), 261120  }
  0x22   : > { %s4192_s5 = scalar_select %p577_p11, %s3988_s26, %s579_s4  }
  0x23   : > { %s4676_s30 = sand.u32 (!%p745_p10), 1, %s3984_s25   ;;  %p870_p12 = scmp.lt.s32.totalorder (!%p745_p10), %s3992_s27, 1  ;;  %3489 = vmatprep.mubr.msk.bf16.mxu1 (!%p745_p10), %vm4011_vm0, %v4010_v0  ;;  %3513 = vmatprep.mubr.msk.bf16.mxu0 (!%p745_p10), %vm4011_vm0, %v4010_v0 }
  0x24   : > { %4710 = sst [smem:[#allocation16_spill]] %s4192_s5  ;;  %s4198_s28 = sshll.u32 (!%p745_p10), %s4676_s30, 3 }
  0x25   : > { %p866_p13 = scmp.lt.s32.totalorder (!%p745_p10), %s3996_s3, 1  ;;  %s4711_s5 = sld [smem:[#allocation20_spill]] (!%p745_p10) }
  0x26   : > { %p934_p0 = scmp.eq.s32.totalorder (!%p745_p10), %s3992_s27, 0  ;;  %s4712_s22 = sld [smem:[#allocation17_spill]] (!%p745_p10) }
  0x27   : > { %s4713_s23 = sld [smem:[#allocation22_spill]] (!%p745_p10)  ;;  %s4714_s7 = sld [smem:[#allocation24_spill]] (!%p745_p10) }
  0x28   : > { %s4208_s24 = scalar_select %p870_p12, %s3992_s27, 1 }
  0x29   : > { %s867_s4 = scalar_select %p866_p13, %s3996_s3, 1 }
  0x2a   : > { %s4212_s30 = sshll.u32 %s4208_s24, 7  ;;  %s4715_s6 = sld [smem:[#allocation23_spill]] }
  0x2b   : > { %s4218_s26 = scalar_lea.vmem %s4711_s5, %s4212_s30  ;;  %s3228_s1 = sshll.u32 %s867_s4, 3 }
  0x2c   : > { %v3824_v1 = vld [vmem:[%s4218_s26] sm:$0xff]   ;;  %v3826_v3 = vld [vmem:[%s4218_s26 + $0x8] sm:$0xff]   ;;  %s869_s2 = scalar_lea.vmem %s4712_s22, %s3228_s1  ;;  %v3828_v5 = vld [vmem:[%s4218_s26 + $0x10] sm:$0xff]   ;;  %s4716_s5 = sld [smem:[#allocation21_spill]] }
  0x2d   : > { %v3825_v2 = vld [vmem:[%s4218_s26 + $0x40] sm:$0xff]   ;;  %3482 = vmatpush3.bf16.msra.mxu1 %v3824_v1  ;;  %v3827_v4 = vld [vmem:[%s4218_s26 + $0x48] sm:$0xff]   ;;  %s4235_s25 = scalar_lea.vmem %s4713_s23, %s4212_s30  ;;  %v3829_v6 = vld [vmem:[%s4218_s26 + $0x50] sm:$0xff]   ;;  %s4279_s0 = scalar_lea.vmem %s4714_s7, %s4212_s30 }
  0x2e   : > { %3506 = vmatpush3.bf16.msra.mxu0 %v3825_v2  ;;  %3483 = vmatprep.subr.bf16.mxu1 %v4010_v0  ;;  %v935_v7 = vld [vmem:[%s869_s2] sm:$0xff]  ;;  %s937_s4 = scalar_select %p934_p0, 1, 0  ;;  %v3830_v9 = vld [vmem:[%s4218_s26 + $0x18] sm:$0xff]   ;;  %v3834_v16 = vld [vmem:[%s4218_s26 + $0x28] sm:$0xff]  }
  0x2f   : > { %3507 = vmatprep.subr.bf16.mxu0 %v4010_v0  ;;  %v3831_v11 = vld [vmem:[%s4218_s26 + $0x58] sm:$0xff]   ;;  %v3832_v14 = vld [vmem:[%s4218_s26 + $0x20] sm:$0xff]   ;;  %v3835_v17 = vld [vmem:[%s4235_s25 + $0x8] sm:$0xff]   ;;  %s4717_s8 = sld [smem:[#allocation25_spill]]  ;;  %s4719_s30 = sld [smem:[#allocation19_spill]] }
  0x30   : > { %v938_v10 = vstv %s937_s4  ;;  %v3833_v15 = vld [vmem:[%s4235_s25] sm:$0xff]   ;;  %v3836_v18 = vld [vmem:[%s4218_s26 + $0x30] sm:$0xff]   ;;  %v3838_v20 = vld [vmem:[%s4218_s26 + $0x38] sm:$0xff]   ;;  %s3371_s29 = sshll.u32 %s4208_s24, 5  ;;  %p3356_p1 = scmp.ge.s32.totalorder %s3992_s27, 1 }
  0x31   : > { %3484 = vmatpush3.bf16.msra.mxu1 %v3826_v3  ;;  %vm939_vm1 = vcmp.eq.s32.totalorder %v938_v10, 1  ;;  %v3837_v19 = vld [vmem:[%s4235_s25 + $0x10] sm:$0xff]   ;;  %v3839_v21 = vld [vmem:[%s4235_s25 + $0x18] sm:$0xff]   ;;  %v3840_v22 = vld [vmem:[%s4218_s26 + $0x60] sm:$0xff]   ;;  %s4483_s4 = scalar_lea.vmem %s4661_s9, %s3371_s29 }
  0x32   : > { %3508 = vmatpush3.bf16.msra.mxu0 %v3827_v4  ;;  %3485 = vmatprep.subr.bf16.mxu1 %v4010_v0  ;;  %v4244_v12 = vsel %vm939_vm1, %v935_v7, %v936_v8  ;;  %v3841_v23 = vld [vmem:[%s4235_s25 + $0x40] sm:$0xff]   ;;  %v3842_v24 = vld [vmem:[%s4218_s26 + $0x68] sm:$0xff]   ;;  %v3844_v26 = vld [vmem:[%s4218_s26 + $0x70] sm:$0xff]  }
  0x33   : > { %3509 = vmatprep.subr.bf16.mxu0 %v4010_v0  ;;  %v4248_v13 = vpack.c.bf16 %v4244_v12, %v4244_v12  ;;  %v3843_v25 = vld [vmem:[%s4235_s25 + $0x48] sm:$0xff]   ;;  %v3845_v27 = vld [vmem:[%s4235_s25 + $0x50] sm:$0xff]   ;;  %v3846_v28 = vld [vmem:[%s4218_s26 + $0x78] sm:$0xff]   ;;  %s4718_s26 = sld [smem:[#allocation18_spill]] }
  0x34   : > { %v3847_v29 = vld [vmem:[%s4235_s25 + $0x58] sm:$0xff]   ;;  %v3848_v30 = vld [vmem:[%s4235_s25 + $0x20] sm:$0xff]   ;;  %v3849_v32 = vld [vmem:[%s4235_s25 + $0x28] sm:$0xff]  }
  0x35   : > { %3486 = vmatpush3.bf16.msra.mxu1 %v3828_v5  ;;  %v3856_v31 = vld [vmem:[%s4279_s0] sm:$0xff]   ;;  %v3857_v33 = vld [vmem:[%s4279_s0 + $0x8] sm:$0xff]   ;;  %v3850_v34 = vld [vmem:[%s4235_s25 + $0x30] sm:$0xff]  }
  0x36   : > { %3510 = vmatpush3.bf16.msra.mxu0 %v3829_v6  ;;  %3487 = vmatprep.subr.bf16.mxu1 %v4010_v0  ;;  %v3858_v35 = vld [vmem:[%s4279_s0 + $0x10] sm:$0xff]   ;;  %v3851_v36 = vld [vmem:[%s4235_s25 + $0x38] sm:$0xff]   ;;  %v3852_v38 = vld [vmem:[%s4235_s25 + $0x60] sm:$0xff]  }
  0x37   : > { %3511 = vmatprep.subr.bf16.mxu0 %v4010_v0  ;;  %v3859_v37 = vld [vmem:[%s4279_s0 + $0x18] sm:$0xff]   ;;  %v3853_v39 = vld [vmem:[%s4235_s25 + $0x68] sm:$0xff]   ;;  %v3854_v40 = vld [vmem:[%s4235_s25 + $0x70] sm:$0xff]  }
  0x38   : > { %v3855_v41 = vld [vmem:[%s4235_s25 + $0x78] sm:$0xff]   ;;  %v3860_v42 = vld [vmem:[%s4279_s0 + $0x40] sm:$0xff]   ;;  %v3861_v43 = vld [vmem:[%s4279_s0 + $0x48] sm:$0xff]   ;;  %s4387_s25 = sshll.u32 %s4208_s24, 2 }
  0x39   : > { %3488 = vmatpush3.bf16.msra.mxu1 %v3830_v9  ;;  %v3862_v44 = vld [vmem:[%s4279_s0 + $0x50] sm:$0xff]   ;;  %v3863_v45 = vld [vmem:[%s4279_s0 + $0x58] sm:$0xff]   ;;  %v3864_v46 = vld [vmem:[%s4279_s0 + $0x20] sm:$0xff]   ;;  %s4393_s1 = scalar_lea.vmem %s4715_s6, %s4387_s25  ;;  %s4400_s22 = scalar_lea.vmem %s4716_s5, %s4387_s25 }
  0x3a   : > { %3512 = vmatpush3.bf16.msra.mxu0 %v3831_v11  ;;  %3493 = vmatprep.subr.bf16.mxu1 %v4010_v0  ;;  %v3865_v47 = vld [vmem:[%s4279_s0 + $0x28] sm:$0xff]   ;;  %v3866_v48 = vld [vmem:[%s4279_s0 + $0x30] sm:$0xff]   ;;  %v3867_v49 = vld [vmem:[%s4279_s0 + $0x38] sm:$0xff]   ;;  %s4416_s2 = scalar_lea.vmem %s4717_s8, %s4387_s25  ;;  %s915_s5 = scalar_lea.vmem %s4665_s13, %s3371_s29 }
  0x3b   : > { %3529 = vmatprep.subr.bf16.mxu0 %v4010_v0  ;;  %v3868_v50 = vld [vmem:[%s4279_s0 + $0x60] sm:$0xff]   ;;  %v3869_v51 = vld [vmem:[%s4279_s0 + $0x68] sm:$0xff]   ;;  %v3870_v52 = vld [vmem:[%s4279_s0 + $0x70] sm:$0xff]   ;;  %s907_s25 = scalar_lea.vmem %s4663_s11, %s4208_s24 }
  0x3c   : > { %3490 = vmatmul.mubr.msk.bf16.vlgmr.msra.gmra.mrb[0].mxu1 %vm1026_vm2, %v4248_v13  ;;  %v3871_v53 = vld [vmem:[%s4279_s0 + $0x78] sm:$0xff]   ;;  %v3268_v62 = vld [vmem:[%s4393_s1] ss:$0 sm:$0xff]  ;;  %s926_s0 = scalar_lea.vmem %s4668_s16, %s4208_s24 }
  0x3d   : > { %3494 = vmatpush3.bf16.msra.mxu1 %v3832_v14  ;;  %3514 = vmatmul.mubr.msk.bf16.vlgmr.msra.gmra.mrb[0].mxu0 %vm1026_vm2, %v4248_v13  ;;  %v3244_v10 = vld [vmem:[%s4400_s22] ss:$0 sm:$0xff] }
  0x3e   : > { %3530 = vmatpush3.bf16.msra.mxu0 %v3833_v15  ;;  %3495 = vmatprep.subr.bf16.mxu1 %v4010_v0  ;;  %v3270_v15 = vld [vmem:[%s4393_s1 + $0x2] ss:$0 sm:$0xff] }
  0x3f   : > { %3531 = vmatprep.subr.bf16.mxu0 %v4010_v0  ;;  %3501 = vmatprep.mubr.msk.bf16.mxu1 %vm4011_vm0, %v4010_v0 }
  0x40   : > { %3537 = vmatprep.mubr.msk.bf16.mxu0 %vm4011_vm0, %v4010_v0 }
  0x41   : > { %3496 = vmatpush3.bf16.msra.mxu1 %v3834_v16 }
  0x42   : > { %3532 = vmatpush3.bf16.msra.mxu0 %v3835_v17  ;;  %3497 = vmatprep.subr.bf16.mxu1 %v4010_v0 }
  0x43   : > { %3533 = vmatprep.subr.bf16.mxu0 %v4010_v0 }
  0x45   : > { %3498 = vmatpush3.bf16.msra.mxu1 %v3836_v18 }
  0x46   : > { %3534 = vmatpush3.bf16.msra.mxu0 %v3837_v19  ;;  %3499 = vmatprep.subr.bf16.mxu1 %v4010_v0 }
  0x47   : > { %3535 = vmatprep.subr.bf16.mxu0 %v4010_v0 }
  0x49   : > { %3500 = vmatpush3.bf16.msra.mxu1 %v3838_v20 }
  0x4a   : > { %3536 = vmatpush3.bf16.msra.mxu0 %v3839_v21  ;;  %3517 = vmatprep.subr.bf16.mxu1 %v4010_v0 }
  0x4b   : > { %3553 = vmatprep.subr.bf16.mxu0 %v4010_v0 }
  0x4c   : > { %3502 = vmatmul.mubr.msk.bf16.vlgmr.msra.gmra.mrb[4].mxu1 %vm1026_vm2, %v4248_v13 }
  0x4d   : > { %3538 = vmatmul.mubr.msk.bf16.vlgmr.msra.gmra.mrb[4].mxu0 %vm1026_vm2, %v4248_v13  ;;  %3518 = vmatpush3.bf16.msra.mxu1 %v3840_v22 }
  0x4e   : > { %3554 = vmatpush3.bf16.msra.mxu0 %v3841_v23  ;;  %3519 = vmatprep.subr.bf16.mxu1 %v4010_v0 }
  0x4f   : > { %3555 = vmatprep.subr.bf16.mxu0 %v4010_v0  ;;  %3525 = vmatprep.mubr.msk.bf16.mxu1 %vm4011_vm0, %v4010_v0 }
  0x50   : > { %3561 = vmatprep.mubr.msk.bf16.mxu0 %vm4011_vm0, %v4010_v0 }
  0x51   : > { %3520 = vmatpush3.bf16.msra.mxu1 %v3842_v24 }
  0x52   : > { %3556 = vmatpush3.bf16.msra.mxu0 %v3843_v25  ;;  %3521 = vmatprep.subr.bf16.mxu1 %v4010_v0 }
  0x53   : > { %3557 = vmatprep.subr.bf16.mxu0 %v4010_v0 }
  0x55   : > { %3522 = vmatpush3.bf16.msra.mxu1 %v3844_v26  ;;  %v3246_v26 = vld [vmem:[%s4400_s22 + $0x2] ss:$0 sm:$0xff] }
  0x56   : > { %3558 = vmatpush3.bf16.msra.mxu0 %v3845_v27  ;;  %3523 = vmatprep.subr.bf16.mxu1 %v4010_v0 }
  0x57   : > { %3559 = vmatprep.subr.bf16.mxu0 %v4010_v0 }
  0x59   : > { %3524 = vmatpush3.bf16.msra.mxu1 %v3846_v28 }
  0x5a   : > { %3560 = vmatpush3.bf16.msra.mxu0 %v3847_v29  ;;  %3541 = vmatprep.subr.bf16.mxu1 %v4010_v0 }
  0x5b   : > { %3577 = vmatprep.subr.bf16.mxu0 %v4010_v0 }
  0x5c   : > { %3526 = vmatmul.mubr.msk.bf16.vlgmr.msra.gmra.mrb[8].mxu1 %vm1026_vm2, %v4248_v13 }
  0x5d   : > { %3562 = vmatmul.mubr.msk.bf16.vlgmr.msra.gmra.mrb[8].mxu0 %vm1026_vm2, %v4248_v13  ;;  %3542 = vmatpush3.bf16.msra.mxu1 %v3848_v30  ;;  %v3269_v30 = vld [vmem:[%s4393_s1 + $0x1] ss:$0 sm:$0xff] }
  0x5e   : > { %3543 = vmatprep.subr.bf16.mxu1 %v4010_v0  ;;  %3549 = vmatprep.mubr.msk.bf16.mxu1 %vm4011_vm0, %v4010_v0 }
  0x5f   : > { %3578 = vmatpush3.bf16.msra.mxu0 %v3856_v31  ;;  %3585 = vmatprep.mubr.msk.bf16.mxu0 %vm4011_vm0, %v4010_v0 }
  0x60   : > { %3579 = vmatprep.subr.bf16.mxu0 %v4010_v0 }
  0x61   : > { %3544 = vmatpush3.bf16.msra.mxu1 %v3849_v32  ;;  %v3292_v32 = vld [vmem:[%s4416_s2] ss:$0 sm:$0xff] }
  0x62   : > { %3545 = vmatprep.subr.bf16.mxu1 %v4010_v0 }
  0x63   : > { %3580 = vmatpush3.bf16.msra.mxu0 %v3857_v33 }
  0x64   : > { %3581 = vmatprep.subr.bf16.mxu0 %v4010_v0 }
  0x65   : > { %3546 = vmatpush3.bf16.msra.mxu1 %v3850_v34 }
  0x66   : > { %3547 = vmatprep.subr.bf16.mxu1 %v4010_v0 }
  0x67   : > { %3582 = vmatpush3.bf16.msra.mxu0 %v3858_v35 }
  0x68   : > { %3583 = vmatprep.subr.bf16.mxu0 %v4010_v0 }
  0x69   : > { %3548 = vmatpush3.bf16.msra.mxu1 %v3851_v36 }
  0x6a   : > { %3565 = vmatprep.subr.bf16.mxu1 %v4010_v0 }
  0x6b   : > { %3584 = vmatpush3.bf16.msra.mxu0 %v3859_v37 }
  0x6c   : > { %3550 = vmatmul.mubr.msk.bf16.vlgmr.msra.gmra.mrb[12].mxu1 %vm1026_vm2, %v4248_v13  ;;  %3601 = vmatprep.subr.bf16.mxu0 %v4010_v0 }
  0x6d   : > { %3566 = vmatpush3.bf16.msra.mxu1 %v3852_v38  ;;  %3573 = vmatprep.mubr.msk.bf16.mxu1 %vm4011_vm0, %v4010_v0 }
  0x6e   : > { %3567 = vmatprep.subr.bf16.mxu1 %v4010_v0  ;;  %3586 = vmatmul.mubr.msk.bf16.vlgmr.msra.gmra.mrb[12].mxu0 %vm1026_vm2, %v4248_v13 }
  0x6f   : > { %3609 = vmatprep.mubr.msk.bf16.mxu0 %vm4011_vm0, %v4010_v0  ;;  %3602 = vmatpush3.bf16.msra.mxu0 %v3860_v42 }
  0x70   : > { %3603 = vmatprep.subr.bf16.mxu0 %v4010_v0 }
  0x71   : > { %3568 = vmatpush3.bf16.msra.mxu1 %v3853_v39 }
  0x72   : > { %3569 = vmatprep.subr.bf16.mxu1 %v4010_v0 }
  0x73   : > { %3604 = vmatpush3.bf16.msra.mxu0 %v3861_v43 }
  0x74   : > { %3605 = vmatprep.subr.bf16.mxu0 %v4010_v0 }
  0x75   : > { %3570 = vmatpush3.bf16.msra.mxu1 %v3854_v40 }
  0x76   : > { %3571 = vmatprep.subr.bf16.mxu1 %v4010_v0 }
  0x77   : > { %3606 = vmatpush3.bf16.msra.mxu0 %v3862_v44 }
  0x78   : > { %3607 = vmatprep.subr.bf16.mxu0 %v4010_v0 }
  0x79   : > { %3572 = vmatpush3.bf16.msra.mxu1 %v3855_v41  ;;  %v3245_v41 = vld [vmem:[%s4400_s22 + $0x1] ss:$0 sm:$0xff] }
  0x7a   : > { %3589 = vmatprep.subr.bf16.mxu1 %v4010_v0 }
  0x7b   : > { %3608 = vmatpush3.bf16.msra.mxu0 %v3863_v45 }
  0x7c   : > { %3574 = vmatmul.mubr.msk.bf16.vlgmr.msra.gmra.mrb[16].mxu1 %vm1026_vm2, %v4248_v13  ;;  %3625 = vmatprep.subr.bf16.mxu0 %v4010_v0 }
  0x7d   : > { %3597 = vmatprep.mubr.msk.bf16.mxu1 %vm4011_vm0, %v4010_v0  ;;  %3590 = vmatpush3.bf16.msra.mxu1 %v3864_v46 }
  0x7e   : > { %3610 = vmatmul.mubr.msk.bf16.vlgmr.msra.gmra.mrb[16].mxu0 %vm1026_vm2, %v4248_v13  ;;  %3591 = vmatprep.subr.bf16.mxu1 %v4010_v0 }
  0x7f   : > { %3627 = vmatprep.mubr.msk.bf16.mxu0 %vm4011_vm0, %v4010_v0 }
  0x81   : > { %3592 = vmatpush3.bf16.msra.mxu1 %v3865_v47 }
  0x82   : > { %3593 = vmatprep.subr.bf16.mxu1 %v4010_v0 }
  0x85   : > { %3594 = vmatpush3.bf16.msra.mxu1 %v3866_v48 }
  0x86   : > { %3595 = vmatprep.subr.bf16.mxu1 %v4010_v0 }
  0x89   : > { %3596 = vmatpush3.bf16.msra.mxu1 %v3867_v49  ;;  %v3271_v49 = vld [vmem:[%s4393_s1 + $0x3] ss:$0 sm:$0xff]  ;;  %s910_s1 = scalar_lea.vmem %s4664_s12, %s4208_s24 }
  0x8a   : > { %3613 = vmatprep.subr.bf16.mxu1 %v4010_v0 }
  0x8c   : > { %3598 = vmatmul.mubr.msk.bf16.vlgmr.msra.gmra.mrb[20].mxu1 %vm1026_vm2, %v4248_v13 }
  0x8d   : > { %3614 = vmatpush3.bf16.msra.mxu1 %v3868_v50  ;;  %3621 = vmatprep.mubr.msk.bf16.mxu1 %vm4011_vm0, %v4010_v0 }
  0x8e   : > { %3615 = vmatprep.subr.bf16.mxu1 %v4010_v0 }
  0x91   : > { %3616 = vmatpush3.bf16.msra.mxu1 %v3869_v51 }
  0x92   : > { %3617 = vmatprep.subr.bf16.mxu1 %v4010_v0 }
  0x95   : > { %3618 = vmatpush3.bf16.msra.mxu1 %v3870_v52 }
  0x96   : > { %3619 = vmatprep.subr.bf16.mxu1 %v4010_v0 }
  0x99   : > { %3620 = vmatpush3.bf16.msra.mxu1 %v3871_v53 }
  0x9a   : > { %3631 = vmatprep.subr.bf16.mxu1 %v4010_v0 }
  0x9c   : > { %3622 = vmatmul.mubr.msk.bf16.vlgmr.msra.gmra.mrb[24].mxu1 %vm1026_vm2, %v4248_v13 }
  0x9d   : > { %3633 = vmatprep.mubr.msk.bf16.mxu1 %vm4011_vm0, %v4010_v0 }
 0x10f   : > { %v1064_v54 = vpop.f32.mrb[0].mxu1 }
 0x110   : > { %v3491_v55 = vpop.f32.mrb[1].mxu1  ;;  %v1192_v56 = vpop.f32.mrb[0].mxu0  ;;  %v1065_v13 = vadd.f32 %v3244_v10, %v1064_v54 }
 0x111   : > { %v1067_v57 = vpop.f32.mrb[2].mxu1  ;;  %v3515_v58 = vpop.f32.mrb[1].mxu0  ;;  %v1193_v28 = vadd.f32 %v3246_v26, %v1192_v56  ;;  %v3247_v56 = vld [vmem:[%s4400_s22 + $0x3] ss:$0 sm:$0xff]  ;;  %s3373_s22 = sshll.u32 %s4208_s24, 6 }
 0x112   : > { %v3492_v59 = vpop.f32.mrb[3].mxu1  ;;  %v1195_v60 = vpop.f32.mrb[2].mxu0  ;;  %v1894_v14 = vpack.c.bf16 %v1065_v13, %v1065_v13 }
 0x113   : > { %v3516_v61 = vpop.f32.mrb[3].mxu0  ;;  %v1896_v29 = vpack.c.bf16 %v1193_v28, %v1193_v28 }
 0x11f   : > { %v1128_v63 = vpop.f32.mrb[4].mxu1 }
 0x120   : > { %v1380_v1 = vpop.f32.mrb[4].mxu0  ;;  %v3503_v2 = vpop.f32.mrb[5].mxu1  ;;  %v1129_v46 = vadd.f32 %v3245_v41, %v1128_v63 }
 0x121   : > { %v1381_v3 = vadd.f32 %v3268_v62, %v1380_v1  ;;  %v1131_v4 = vpop.f32.mrb[6].mxu1  ;;  %v3539_v5 = vpop.f32.mrb[5].mxu0  ;;  %v3293_v1 = vld [vmem:[%s4416_s2 + $0x1] ss:$0 sm:$0xff] }
 0x122   : > { %v3504_v6 = vpop.f32.mrb[7].mxu1  ;;  %v1383_v7 = vpop.f32.mrb[6].mxu0  ;;  %v1895_v48 = vpack.c.bf16 %v1129_v46, %v1129_v46 }
 0x123   : > { %v1898_v8 = vpack.c.bf16 %v1381_v3, %v1381_v3  ;;  %v3540_v9 = vpop.f32.mrb[7].mxu0 }
 0x125   : > { %v1908_v11 = vsel %vm1903_vm3, %v1898_v8, 0 }
 0x126   : > { %3626 = vmatpush3.bf16.xpose.msra.mxu0 %v1908_v11 }
 0x127   : > { %3637 = vmatprep.subr.bf16.mxu0 %v4010_v0 }
 0x12d   : > { %3628 = vmatmul.mubr.msk.bf16.vlgmr.msra.gmra.mrb[20].mxu0 %vm1903_vm3, %v1894_v14  ;;  %v1902_v14 = vld [vmem:[%s4718_s26] sm:$0xff]  ;;  %s904_s26 = scalar_lea.vmem %s4662_s10, %s4208_s24 }
 0x12e   : > { %3639 = vmatprep.mubr.msk.bf16.mxu0 %vm4011_vm0, %v4010_v0 }
 0x12f   : > { %v1256_v16 = vpop.f32.mrb[8].mxu1 }
 0x130   : > { %v1508_v17 = vpop.f32.mrb[8].mxu0  ;;  %v3527_v18 = vpop.f32.mrb[9].mxu1  ;;  %v1257_v58 = vadd.f32 %v3247_v56, %v1256_v16 }
 0x131   : > { %v1509_v19 = vadd.f32 %v3270_v15, %v1508_v17  ;;  %v1259_v20 = vpop.f32.mrb[10].mxu1  ;;  %v3563_v21 = vpop.f32.mrb[9].mxu0 }
 0x132   : > { %v3528_v22 = vpop.f32.mrb[11].mxu1  ;;  %v1511_v23 = vpop.f32.mrb[10].mxu0  ;;  %v1897_v59 = vpack.c.bf16 %v1257_v58, %v1257_v58 }
 0x133   : > { %v1900_v24 = vpack.c.bf16 %v1509_v19, %v1509_v19  ;;  %v3564_v25 = vpop.f32.mrb[11].mxu0 }
 0x135   : > { %v2000_v27 = vsel %vm1903_vm3, %v1900_v24, 0 }
 0x136   : > { %3638 = vmatpush3.bf16.xpose.msra.mxu0 %v2000_v27 }
 0x137   : > { %3649 = vmatprep.subr.bf16.mxu0 %v4010_v0 }
 0x13d   : > { %3640 = vmatmul.mubr.msk.bf16.vlgmr.msra.gmra.mrb[24].mxu0 %vm1903_vm3, %v1896_v29 }
 0x13e   : > { %3651 = vmatprep.mubr.msk.bf16.mxu0 %vm4011_vm0, %v4010_v0 }
 0x13f   : > { %v1444_v31 = vpop.f32.mrb[12].mxu1 }
 0x140   : > { %v1445_v33 = vadd.f32 %v3269_v30, %v1444_v31  ;;  %v3551_v34 = vpop.f32.mrb[13].mxu1 }
 0x141   : > { %v1447_v35 = vpop.f32.mrb[14].mxu1  ;;  %v1696_v36 = vpop.f32.mrb[12].mxu0 }
 0x142   : > { %v1899_v37 = vpack.c.bf16 %v1445_v33, %v1445_v33  ;;  %v3552_v38 = vpop.f32.mrb[15].mxu1  ;;  %v1697_v39 = vadd.f32 %v3292_v32, %v1696_v36  ;;  %v3587_v40 = vpop.f32.mrb[13].mxu0 }
 0x143   : > { %v1699_v42 = vpop.f32.mrb[14].mxu0 }
 0x144   : > { %v1954_v43 = vsel %vm1903_vm3, %v1899_v37, 0  ;;  %v2137_v44 = vpack.c.bf16 %v1697_v39, %v1697_v39  ;;  %v3588_v45 = vpop.f32.mrb[15].mxu0 }
 0x145   : > { %3632 = vmatpush3.bf16.xpose.msra.mxu1 %v1954_v43 }
 0x146   : > { %3643 = vmatprep.subr.bf16.mxu1 %v4010_v0  ;;  %v2146_v47 = vsel %vm2144_vm4, %v2137_v44, 0 }
 0x147   : > { %3650 = vmatpush3.bf16.msra.mxu0 %v2146_v47 }
 0x148   : > { %3661 = vmatprep.subr.bf16.mxu0 %v4010_v0 }
 0x14c   : > { %3634 = vmatmul.mubr.msk.bf16.vlgmr.msra.gmra.mrb[28].mxu1 %vm1903_vm3, %v1895_v48 }
 0x14d   : > { %3645 = vmatprep.mubr.msk.bf16.mxu1 %vm4011_vm0, %v4010_v0 }
 0x14f   : > { %v1572_v50 = vpop.f32.mrb[16].mxu1 }
 0x150   : > { %v1573_v51 = vadd.f32 %v3271_v49, %v1572_v50  ;;  %v3575_v52 = vpop.f32.mrb[17].mxu1 }
 0x151   : > { %v1575_v53 = vpop.f32.mrb[18].mxu1  ;;  %v4438_v60 = vpop.f32.mrb[16].mxu0 }
 0x152   : > { %v1901_v54 = vpack.c.bf16 %v1573_v51, %v1573_v51  ;;  %v3576_v55 = vpop.f32.mrb[19].mxu1  ;;  %v3611_v61 = vpop.f32.mrb[17].mxu0 }
 0x153   : > { %v1827_v62 = vpop.f32.mrb[18].mxu0  ;;  %v3294_v61 = vld [vmem:[%s4416_s2 + $0x2] ss:$0 sm:$0xff] }
 0x154   : > { %v2046_v57 = vsel %vm1903_vm3, %v1901_v54, 0  ;;  %v3612_v63 = vpop.f32.mrb[19].mxu0  ;;  %v1825_v62 = vadd.f32 %v3294_v61, %v4438_v60  ;;  %v3295_v60 = vld [vmem:[%s4416_s2 + $0x3] ss:$0 sm:$0xff]  ;;  %s4531_s2 = scalar_lea.vmem %s4667_s15, %s3373_s22  ;;  %s865_s22 = scalar_lea.vmem [#allocation3], %s4198_s28 }
 0x155   : > { %3644 = vmatpush3.bf16.xpose.msra.mxu1 %v2046_v57 }
 0x156   : > { %3655 = vmatprep.subr.bf16.mxu1 %v4010_v0 }
 0x15c   : > { %3646 = vmatmul.mubr.msk.bf16.vlgmr.msra.gmra.mrb[32].mxu1 %vm1903_vm3, %v1897_v59 }
 0x15d   : > { %3657 = vmatprep.mubr.msk.bf16.mxu1 %vm4011_vm0, %v4010_v0 }
 0x15f   : > { %v1760_v2 = vpop.f32.mrb[20].mxu1 }
 0x160   : > { %v1761_v3 = vadd.f32 %v3293_v1, %v1760_v2  ;;  %v3599_v4 = vpop.f32.mrb[21].mxu1  ;;  %v2139_v1 = vpack.c.bf16 %v1825_v62, %v1825_v62 }
 0x161   : > { %v1763_v5 = vpop.f32.mrb[22].mxu1 }
 0x162   : > { %v2138_v6 = vpack.c.bf16 %v1761_v3, %v1761_v3  ;;  %v3600_v7 = vpop.f32.mrb[23].mxu1  ;;  %v2238_v4 = vsel %vm2144_vm4, %v2139_v1, 0 }
 0x164   : > { %v2192_v8 = vsel %vm2144_vm4, %v2138_v6, 0 }
 0x165   : > { %3656 = vmatpush3.bf16.msra.mxu1 %v2192_v8 }
 0x166   : > { %3667 = vmatprep.subr.bf16.mxu1 %v4010_v0 }
 0x16f   : > { %v4443_v9 = vpop.f32.mrb[24].mxu1 }
 0x170   : > { %v3623_v10 = vpop.f32.mrb[25].mxu1 }
 0x171   : > { %v1891_v11 = vpop.f32.mrb[26].mxu1 }
 0x172   : > { %v3624_v13 = vpop.f32.mrb[27].mxu1  ;;  %v1889_v11 = vadd.f32 %v3295_v60, %v4443_v9 }
 0x200   : > { %v1944_v15 = vpop.f32.mrb[20].mxu0 }
 0x201   : > { %v1945_v16 = vadd.f32 %v1944_v15, %v1902_v14  ;;  %v3629_v17 = vpop.f32.mrb[21].mxu0 }
 0x202   : > { %v1947_v18 = vpop.f32.mrb[22].mxu0 }
 0x203   : > { %v3630_v19 = vpop.f32.mrb[23].mxu0  ;;  %v2089_v20 = vsel %vm2088_vm5, %v1945_v16, -inf }
 0x204   : > { %2090 = vmax.xlane.f32.xlu0 %v2089_v20 }
 0x210   : > { %v2036_v21 = vpop.f32.mrb[24].mxu0 }
 0x211   : > { %v2037_v22 = vadd.f32 %v2036_v21, %v1902_v14  ;;  %v3641_v23 = vpop.f32.mrb[25].mxu0  ;;  %v3872_v21 = vld [vmem:[%s4719_s30] sm:$0xff]  }
 0x212   : > { %v2039_v24 = vpop.f32.mrb[26].mxu0 }
 0x213   : > { %v3642_v25 = vpop.f32.mrb[27].mxu0  ;;  %v2095_v26 = vsel %vm2088_vm5, %v2037_v22, -inf }
 0x214   : > { %2096 = vmax.xlane.f32.xlu1 %v2095_v26 }
 0x21f   : > { %v1990_v27 = vpop.f32.mrb[28].mxu1 }
 0x220   : > { %v1991_v28 = vadd.f32 %v1990_v27, %v1902_v14  ;;  %v3635_v29 = vpop.f32.mrb[29].mxu1 }
 0x221   : > { %v1993_v30 = vpop.f32.mrb[30].mxu1 }
 0x222   : > { %v3636_v31 = vpop.f32.mrb[31].mxu1  ;;  %v2092_v32 = vsel %vm2088_vm5, %v1991_v28, -inf }
 0x223   : > { %2093 = vmax.xlane.f32.xlu0 %v2092_v32 }
 0x22f   : > { %v2082_v33 = vpop.f32.mrb[32].mxu1 }
 0x230   : > { %v2083_v34 = vadd.f32 %v2082_v33, %v1902_v14  ;;  %v3647_v35 = vpop.f32.mrb[33].mxu1  ;;  %v2140_v14 = vpack.c.bf16 %v1889_v11, %v1889_v11 }
 0x231   : > { %v2085_v36 = vpop.f32.mrb[34].mxu1 }
 0x232   : > { %v3648_v37 = vpop.f32.mrb[35].mxu1  ;;  %v2098_v38 = vsel %vm2088_vm5, %v2083_v34, -inf  ;;  %v2284_v17 = vsel %vm2144_vm4, %v2140_v14, 0 }
 0x233   : > { %2099 = vmax.xlane.f32.xlu1 %v2098_v38 }
 0x291   : > { %v2091_v39 = vpop.xlane.xlu0 %2090 }
 0x292   : > { %v2101_v40 = vsub.f32 %v1945_v16, %v2091_v39 }
 0x294   : > { %v2105_v41 = vmul.f32 1.442695, %v2101_v40 }
 0x296   : > { %3890 = vpow2.f32 %v2105_v41  ;;  %v3873_v41 = vld [vmem:[%s4719_s30 + $0x8] sm:$0xff]  }
 0x2a0   : > { %v3891_v42 = vpop.eup %3890 }
 0x2a1   : > { %v2097_v43 = vpop.xlane.xlu1 %2096  ;;  %v2113_v44 = vsel %vm2088_vm5, %v3891_v42, 0.0 }
 0x2a2   : > { %v2103_v45 = vsub.f32 %v2037_v22, %v2097_v43  ;;  %2114 = vadd.xlane.f32.xlu0 %v2113_v44  ;;  %v3874_v22 = vld [vmem:[%s4483_s4] sm:$0xff]  }
 0x2a4   : > { %v2109_v46 = vmul.f32 1.442695, %v2103_v45  ;;  %v3876_v45 = vld [vmem:[%s4483_s4 + $0x10] sm:$0xff]  }
 0x2a6   : > { %3892 = vpow2.f32 %v2109_v46 }
 0x2b0   : > { %v3893_v47 = vpop.eup %3892  ;;  %v2094_v48 = vpop.xlane.xlu0 %2093 }
 0x2b1   : > { %v2102_v49 = vsub.f32 %v1991_v28, %v2094_v48  ;;  %v2119_v50 = vsel %vm2088_vm5, %v3893_v47, 0.0 }
 0x2b2   : > { %2120 = vadd.xlane.f32.xlu0 %v2119_v50 }
 0x2b3   : > { %v2107_v51 = vmul.f32 1.442695, %v2102_v49  ;;  %v3877_v49 = vld [vmem:[%s4483_s4 + $0x18] sm:$0xff]  }
 0x2b5   : > { %3894 = vpow2.f32 %v2107_v51 }
 0x2bf   : > { %v3895_v52 = vpop.eup %3894 }
 0x2c0   : > { %v2100_v53 = vpop.xlane.xlu1 %2099  ;;  %v2116_v54 = vsel %vm2088_vm5, %v3895_v52, 0.0 }
 0x2c1   : > { %v2104_v55 = vsub.f32 %v2083_v34, %v2100_v53  ;;  %2117 = vadd.xlane.f32.xlu1 %v2116_v54  ;;  %v3330_v53 = vld [vmem:[%s904_s26] ss:$0 sm:$0xff]  ;;  %s929_s26 = scalar_lea.vmem %s4669_s17, %s4208_s24 }
 0x2c3   : > { %v2111_v56 = vmul.f32 1.442695, %v2104_v55 }
 0x2c5   : > { %3896 = vpow2.f32 %v2111_v56 }
 0x2cf   : > { %v3897_v57 = vpop.eup %3896 }
 0x2d0   : > { %v2122_v58 = vsel %vm2088_vm5, %v3897_v57, 0.0 }
 0x2d1   : > { %2123 = vadd.xlane.f32.xlu1 %v2122_v58 }
 0x32f   : > { %v2115_v59 = vpop.xlane.xlu0 %2114 }
 0x330   : > { %3898 = vrcp.f32 %v2115_v59 }
 0x33a   : > { %v3899_v63 = vpop.eup %3898 }
 0x33b   : > { %v2129_v2 = vmul.f32 %v3899_v63, %v3891_v42  ;;  %v3875_v42 = vld [vmem:[%s4483_s4 + $0x8] sm:$0xff]   ;;  %s918_s4 = scalar_lea.vmem %s4666_s14, %s4208_s24 }
 0x33d   : > { %v2133_v3 = vpack.c.bf16 %v2129_v2, %v2129_v2 }
 0x33f   : > { %3652 = vmatmul.mubr.msk.bf16.vlgmr.msra.gmra.mrb[28].mxu0 %vm2088_vm5, %v2133_v3  ;;  %v2121_v5 = vpop.xlane.xlu0 %2120 }
 0x340   : > { %3662 = vmatpush3.bf16.msra.mxu0 %v2238_v4  ;;  %3900 = vrcp.f32 %v2121_v5  ;;  %3663 = vmatprep.mubr.msk.bf16.mxu0 %vm4011_vm0, %v4010_v0 }
 0x34a   : > { %v3901_v6 = vpop.eup %3900 }
 0x34b   : > { %v2131_v7 = vmul.f32 %v3901_v6, %v3893_v47 }
 0x34d   : > { %v2135_v8 = vpack.c.bf16 %v2131_v7, %v2131_v7 }
 0x34e   : > { %v2118_v10 = vpop.xlane.xlu1 %2117 }
 0x34f   : > { %3664 = vmatmul.mubr.msk.bf16.vlgmr.msra.gmra.mrb[32].mxu0 %vm2088_vm5, %v2135_v8  ;;  %3902 = vrcp.f32 %v2118_v10 }
 0x350   : > { %3677 = vmatprep.mubr.msk.bf16.mxu0 %vm2342_vm6, %v3872_v21  ;;  %v3881_v21 = vld [vmem:[%s915_s5 + $0x18] sm:$0xff]  }
 0x359   : > { %v3903_v13 = vpop.eup %3902 }
 0x35a   : > { %v2130_v15 = vmul.f32 %v3903_v13, %v3895_v52 }
 0x35c   : > { %v2134_v16 = vpack.c.bf16 %v2130_v15, %v2130_v15 }
 0x35e   : > { %3658 = vmatmul.mubr.msk.bf16.vlgmr.msra.gmra.mrb[36].mxu1 %vm2088_vm5, %v2134_v16  ;;  %v2124_v18 = vpop.xlane.xlu1 %2123 }
 0x35f   : > { %3668 = vmatpush3.bf16.msra.mxu1 %v2284_v17  ;;  %3904 = vrcp.f32 %v2124_v18  ;;  %3669 = vmatprep.mubr.msk.bf16.mxu1 %vm4011_vm0, %v4010_v0 }
 0x360   : > { %3681 = vmatprep.subr.bf16.mxu1 %v4010_v0 }
 0x369   : > { %v3905_v19 = vpop.eup %3904 }
 0x36a   : > { %v2132_v9 = vmul.f32 %v3905_v19, %v3897_v57 }
 0x36c   : > { %v2136_v20 = vpack.c.bf16 %v2132_v9, %v2132_v9  ;;  %v3878_v9 = vld [vmem:[%s915_s5] sm:$0xff]  }
 0x36e   : > { %3670 = vmatmul.mubr.msk.bf16.vlgmr.msra.gmra.mrb[40].mxu1 %vm2088_vm5, %v2136_v20  ;;  %v3880_v20 = vld [vmem:[%s915_s5 + $0x10] sm:$0xff]  }
 0x36f   : > { %3683 = vmatprep.mubr.msk.bf16.mxu1 %vm4011_vm0, %v4010_v0  ;;  %3682 = vmatpush3.bf16.msra.mxu1 %v3874_v22  ;;  %v3882_v22 = vld [vmem:[%s4531_s2] sm:$0xff]  }
 0x370   : > { %3693 = vmatprep.subr.bf16.mxu1 %v4010_v0 }
 0x412   : > { %v2182_v23 = vpop.f32.mrb[28].mxu0 }
 0x413   : > { %v3653_v24 = vpop.f32.mrb[29].mxu0 }
 0x414   : > { %v2185_v25 = vpop.f32.mrb[30].mxu0  ;;  %v3884_v24 = vld [vmem:[%s4531_s2 + $0x10] sm:$0xff]  }
 0x415   : > { %v3654_v26 = vpop.f32.mrb[31].mxu0  ;;  %v3885_v25 = vld [vmem:[%s4531_s2 + $0x18] sm:$0xff]  }
 0x416   : > { %v3886_v26 = vld [vmem:[%s4531_s2 + $0x20] sm:$0xff]  }
 0x422   : > { %v2274_v27 = vpop.f32.mrb[32].mxu0 }
 0x423   : > { %v3665_v28 = vpop.f32.mrb[33].mxu0 }
 0x424   : > { %v2277_v29 = vpop.f32.mrb[34].mxu0 }
 0x425   : > { %v3666_v30 = vpop.f32.mrb[35].mxu0 }
 0x431   : > { %v2228_v31 = vpop.f32.mrb[36].mxu1 }
 0x432   : > { %v2326_v32 = vpack.c.bf16 %v2228_v31, %v2182_v23  ;;  %v3659_v33 = vpop.f32.mrb[37].mxu1  ;;  %v3883_v23 = vld [vmem:[%s4531_s2 + $0x8] sm:$0xff]  }
 0x433   : > { %v2231_v34 = vpop.f32.mrb[38].mxu1 }
 0x434   : > { %v3660_v35 = vpop.f32.mrb[39].mxu1  ;;  %3673 = vmatprep.subr.bf16.mxu0 %v2326_v32  ;;  %v3338_v34 = vld [vmem:[%s910_s1] ss:$0 sm:$0xff] }
 0x435   : > { %3674 = vmatpush3.bf16.msra.mxu0 %v2326_v32  ;;  %v3337_v32 = vld [vmem:[%s907_s25] ss:$0 sm:$0xff] }
 0x441   : > { %v2320_v36 = vpop.f32.mrb[40].mxu1 }
 0x442   : > { %v2327_v37 = vpack.c.bf16 %v2320_v36, %v2274_v27  ;;  %v3671_v38 = vpop.f32.mrb[41].mxu1  ;;  %v3887_v27 = vld [vmem:[%s4531_s2 + $0x28] sm:$0xff]  }
 0x443   : > { %v2323_v39 = vpop.f32.mrb[42].mxu1  ;;  %v3888_v38 = vld [vmem:[%s4531_s2 + $0x30] sm:$0xff]  }
 0x444   : > { %v3672_v40 = vpop.f32.mrb[43].mxu1  ;;  %3675 = vmatprep.subr.bf16.mxu0 %v2327_v37  ;;  %v3889_v39 = vld [vmem:[%s4531_s2 + $0x38] sm:$0xff]  }
 0x445   : > { %3676 = vmatpush3.bf16.msra.mxu0 %v2327_v37  ;;  %v3339_v40 = vld [vmem:[%s918_s4] ss:$0 sm:$0xff] }
 0x446   : > { %3687 = vmatprep.subr.bf16.mxu0 %v4010_v0 }
 0x448   : > { %3678 = vmatmul.mubr.msk.bf16.vlgmr.msra.gmra.mrb[36].mxu0 %vm2342_vm6, %v3873_v41 }
 0x449   : > { %3688 = vmatpush3.bf16.msra.mxu0 %v3875_v42  ;;  %3689 = vmatprep.mubr.msk.bf16.mxu0 %vm4011_vm0, %v4010_v0 }
 0x44a   : > { %3699 = vmatprep.subr.bf16.mxu0 %v4010_v0 }
 0x51b   : > { %v3679_v43 = vpop.f32.mrb[36].mxu0 }
 0x51c   : > { %v2383_v44 = vpop.f32.mrb[37].mxu0  ;;  %v2515_v51 = vpack.c.bf16 %v3679_v43, %v3679_v43 }
 0x51d   : > { %v2407_v46 = vpack.c.bf16 %v2383_v44, %v2383_v44  ;;  %v3680_v47 = vpop.f32.mrb[38].mxu0 }
 0x51e   : > { %v2386_v48 = vpop.f32.mrb[39].mxu0  ;;  %v2566_v52 = vpack.c.bf16 %v3680_v47, %v3680_v47 }
 0x51f   : > { %v2464_v50 = vpack.c.bf16 %v2386_v48, %v2386_v48  ;;  %3684 = vmatmul.mubr.msk.bf16.vlgmr.msra.gmra.mrb[44].mxu1 %vm1903_vm3, %v2407_v46 }
 0x520   : > { %3694 = vmatpush3.bf16.msra.mxu1 %v3876_v45  ;;  %3695 = vmatprep.mubr.msk.bf16.mxu1 %vm4011_vm0, %v4010_v0 }
 0x521   : > { %3690 = vmatmul.mubr.msk.bf16.vlgmr.msra.gmra.mrb[40].mxu0 %vm1903_vm3, %v2464_v50  ;;  %3705 = vmatprep.subr.bf16.mxu1 %v4010_v0 }
 0x522   : > { %3700 = vmatpush3.bf16.msra.mxu0 %v3877_v49  ;;  %3701 = vmatprep.mubr.msk.bf16.mxu0 %vm4011_vm0, %v4010_v0 }
 0x523   : > { %3717 = vmatprep.subr.bf16.mxu0 %v4010_v0 }
 0x527   : > { %3696 = vmatmul.mubr.msk.bf16.vlgmr.msra.gmra.mrb[48].mxu1 %vm1903_vm3, %v2515_v51 }
 0x528   : > { %3713 = vmatprep.mubr.msk.bf16.mxu1 %vm4011_vm0, %v4010_v0  ;;  %3706 = vmatpush3.bf16.msra.mxu1 %v3878_v9 }
 0x529   : > { %3702 = vmatmul.mubr.msk.bf16.vlgmr.msra.gmra.mrb[44].mxu0 %vm1903_vm3, %v2566_v52  ;;  %3707 = vmatprep.subr.bf16.mxu1 %v4010_v0 }
 0x52a   : > { %3733 = vmatprep.mubr.msk.bf16.mxu0 %vm4011_vm0, %v4010_v0  ;;  %3718 = vmatpush3.bf16.msra.mxu0 %v3882_v22 }
 0x52b   : > { %3719 = vmatprep.subr.bf16.mxu0 %v4010_v0 }
 0x52e   : > { %3720 = vmatpush3.bf16.msra.mxu0 %v3883_v23 }
 0x52f   : > { %3721 = vmatprep.subr.bf16.mxu0 %v4010_v0 }
 0x532   : > { %3722 = vmatpush3.bf16.msra.mxu0 %v3884_v24 }
 0x533   : > { %3723 = vmatprep.subr.bf16.mxu0 %v4010_v0 }
 0x536   : > { %3724 = vmatpush3.bf16.msra.mxu0 %v3885_v25 }
 0x537   : > { %3725 = vmatprep.subr.bf16.mxu0 %v4010_v0 }
 0x53a   : > { %3726 = vmatpush3.bf16.msra.mxu0 %v3886_v26 }
 0x53b   : > { %3727 = vmatprep.subr.bf16.mxu0 %v4010_v0 }
 0x53e   : > { %3728 = vmatpush3.bf16.msra.mxu0 %v3887_v27 }
 0x53f   : > { %3729 = vmatprep.subr.bf16.mxu0 %v4010_v0 }
 0x542   : > { %3730 = vmatpush3.bf16.msra.mxu0 %v3888_v38 }
 0x543   : > { %3731 = vmatprep.subr.bf16.mxu0 %v4010_v0 }
 0x546   : > { %3732 = vmatpush3.bf16.msra.mxu0 %v3889_v39 }
 0x5f2   : > { %v2451_v54 = vpop.f32.mrb[44].mxu1 }
 0x5f3   : > { %v2463_v55 = vadd.f32 %v3330_v53, %v2451_v54  ;;  %v3685_v56 = vpop.f32.mrb[45].mxu1 }
 0x5f4   : > { %v2454_v57 = vpop.f32.mrb[46].mxu1  ;;  %v2508_v58 = vpop.f32.mrb[40].mxu0 }
 0x5f5   : > { %v2514_v59 = vadd.f32 %v2508_v58, %v2463_v55  ;;  %v3686_v61 = vpop.f32.mrb[47].mxu1  ;;  %v3691_v62 = vpop.f32.mrb[41].mxu0 }
 0x5f6   : > { %v2511_v63 = vpop.f32.mrb[42].mxu0 }
 0x5f7   : > { %v3692_v1 = vpop.f32.mrb[43].mxu0 }
 0x5fa   : > { %v2559_v2 = vpop.f32.mrb[48].mxu1 }
 0x5fb   : > { %v2565_v3 = vadd.f32 %v2559_v2, %v2514_v59  ;;  %v3697_v4 = vpop.f32.mrb[49].mxu1  ;;  %v3354_v2 = vld [vmem:[%s929_s26] ss:$0 sm:$0xff] }
 0x5fc   : > { %v2562_v5 = vpop.f32.mrb[50].mxu1  ;;  %v2610_v6 = vpop.f32.mrb[44].mxu0 }
 0x5fd   : > { %v2616_v7 = vadd.f32 %v2610_v6, %v2565_v3  ;;  %v3698_v8 = vpop.f32.mrb[51].mxu1  ;;  %v3703_v10 = vpop.f32.mrb[45].mxu0 }
 0x5fe   : > { %v2613_v60 = vpop.f32.mrb[46].mxu0 }
 0x5ff   : > { %v3704_v11 = vpop.f32.mrb[47].mxu0  ;;  %v2617_v13 = vadd.f32 %v2616_v7, %v4244_v12  ;;  %v3879_v12 = vld [vmem:[%s915_s5 + $0x8] sm:$0xff]   ;;  %s932_s5 = scalar_lea.vmem %s4670_s18, %s4208_s24 }
 0x600   : > { %3708 = vmatpush3.bf16.msra.mxu1 %v3879_v12  ;;  %v3355_v4 = vld [vmem:[%s932_s5] ss:$0 sm:$0xff] }
 0x601   : > { %v2618_v14 = vsel %vm1026_vm2, %v2617_v13, 0.0  ;;  %3709 = vmatprep.subr.bf16.mxu1 %v4010_v0 }
 0x602   : > { %2619 = vadd.xlane.f32.xlu0 %v2618_v14 }
 0x604   : > { %3710 = vmatpush3.bf16.msra.mxu1 %v3880_v20 }
 0x605   : > { %3711 = vmatprep.subr.bf16.mxu1 %v4010_v0  ;;  %v3345_v0 = vld [vmem:[%s926_s0] ss:$0 sm:$0xff] }
 0x608   : > { %3712 = vmatpush3.bf16.msra.mxu1 %v3881_v21 }
 0x68f   : > { %v2620_v15 = vpop.xlane.xlu0 %2619 }
 0x690   : > { %v2622_v16 = vmul.f32 0.015625, %v2620_v15 }
 0x692   : > { %v2623_v17 = vsub.f32 %v2617_v13, %v2622_v16 }
 0x694   : > { %v2624_v18 = vmul.f32 %v2623_v17, %v2623_v17 }
 0x696   : > { %v2625_v19 = vsel %vm1026_vm2, %v2624_v18, 0.0 }
 0x697   : > { %2626 = vadd.xlane.f32.xlu1 %v2625_v19 }
 0x724   : > { %v2627_v28 = vpop.xlane.xlu1 %2626 }
 0x725   : > { %v2628_v29 = vmul.f32 0.015625, %v2627_v28 }
 0x727   : > { %v2629_v30 = vadd.f32 1e-05, %v2628_v29 }
 0x729   : > { %3906 = vrsqrt.f32 %v2629_v30 }
 0x733   : > { %v3907_v31 = vpop.eup %3906 }
 0x734   : > { %v2631_v33 = vmul.f32 %v3907_v31, %v2623_v17 }
 0x736   : > { %v2639_v35 = vmul.f32 %v3337_v32, %v2631_v33 }
 0x738   : > { %v2647_v36 = vadd.f32 %v3338_v34, %v2639_v35 }
 0x73a   : > { %v2648_v37 = vpack.c.bf16 %v2647_v36, %v2647_v36 }
 0x73c   : > { %3714 = vmatmul.mubr.msk.bf16.vlgmr.msra.gmra.mrb[52].mxu1 %vm1026_vm2, %v2648_v37 }
 0x80f   : > { %v2725_v41 = vpop.f32.mrb[52].mxu1 }
 0x810   : > { %v2726_v42 = vadd.f32 %v3339_v40, %v2725_v41  ;;  %v3715_v43 = vpop.f32.mrb[53].mxu1 }
 0x811   : > { %v2728_v44 = vpop.f32.mrb[54].mxu1 }
 0x812   : > { %v2731_v45 = vmax.f32 %v2726_v42, 0.0  ;;  %v3716_v46 = vpop.f32.mrb[55].mxu1 }
 0x814   : > { %v2732_v47 = vpack.c.bf16 %v2731_v45, %v2731_v45 }
 0x816   : > { %3734 = vmatmul.mubr.bf16.vlgmr.msra.gmra.mrb[48].mxu0 %v2732_v47 }
 0x8e9   : > { %v2838_v48 = vpop.f32.mrb[48].mxu0 }
 0x8ea   : > { %v2839_v49 = vadd.f32 %v3345_v0, %v2838_v48  ;;  %v3735_v50 = vpop.f32.mrb[49].mxu0 }
 0x8eb   : > { %v2841_v51 = vpop.f32.mrb[50].mxu0 }
 0x8ec   : > { %v3736_v52 = vpop.f32.mrb[51].mxu0  ;;  %v2844_v53 = vadd.f32 %v2839_v49, %v2647_v36 }
 0x8ee   : > { %v2845_v54 = vsel %vm1026_vm2, %v2844_v53, 0.0 }
 0x8ef   : > { %2846 = vadd.xlane.f32.xlu0 %v2845_v54 }
 0x97c   : > { %v2847_v55 = vpop.xlane.xlu0 %2846 }
 0x97d   : > { %v2848_v56 = vmul.f32 0.015625, %v2847_v55 }
 0x97f   : > { %v2849_v57 = vsub.f32 %v2844_v53, %v2848_v56 }
 0x981   : > { %v2850_v58 = vmul.f32 %v2849_v57, %v2849_v57 }
 0x983   : > { %v2851_v59 = vsel %vm1026_vm2, %v2850_v58, 0.0 }
 0x984   : > { %2852 = vadd.xlane.f32.xlu1 %v2851_v59 }
 0xa11   : > { %v2853_v61 = vpop.xlane.xlu1 %2852 }
 0xa12   : > { %v2854_v62 = vmul.f32 0.015625, %v2853_v61 }
 0xa14   : > { %v2855_v63 = vadd.f32 1e-05, %v2854_v62 }
 0xa16   : > { %3908 = vrsqrt.f32 %v2855_v63 }
 0xa1f   : > { %2877 = sbr.rel (%p3356_p1) target bundleno = 2600 (0xa28), region = 108 }
 0xa20   : > { %v3909_v1 = vpop.eup %3908 }
 0xa21   : > { %v2857_v3 = vmul.f32 %v3909_v1, %v2849_v57 }
 0xa23   : > { %v2865_v5 = vmul.f32 %v3354_v2, %v2857_v3 }
 0xa25   : > { %v2873_v6 = vadd.f32 %v3355_v4, %v2865_v5 }
 0xa27   : > { %2878 = vst.msk [vmem:[#allocation2] sm:$0xff] %vm1026_vm2, %v2873_v6 }
 0xa28 PF: > { %p3357_p2 = scmp.ne.s32.totalorder %s3992_s27, 1 }
 0xa29   : > { %v3910_v7 = vld [vmem:[%s4671_s19] sm:$0xff] (!%p3357_p2)   ;;  %v4012_v8 = vmov (!%p3357_p2), 0.0   ;;  %v3911_v10 = vld [vmem:[%s4671_s19 + $0x8] sm:$0xff] (!%p3357_p2)   ;;  %vm4013_vm7 = vmmov (!%p3357_p2), 0   ;;  %v3912_v60 = vld [vmem:[%s4671_s19 + $0x10] sm:$0xff] (!%p3357_p2)   ;;  %v2883_v13 = vpack.c.bf16 (!%p3357_p2), %v2873_v6, %v2873_v6 }
 0xa2a   : > { %2882 = sbr.rel (%p3357_p2) target bundleno = 2833 (0xb11), region = 112  ;;  %3737 = vmatprep.subr.bf16.mxu0 (!%p3357_p2), %v4012_v8  ;;  %3745 = vmatprep.mubr.msk.bf16.mxu0 (!%p3357_p2), %vm4013_vm7, %v4012_v8  ;;  %v3913_v11 = vld [vmem:[%s4671_s19 + $0x18] sm:$0xff] (!%p3357_p2)   ;;  %v3358_v14 = vld [vmem:[%s4672_s20] ss:$0 sm:$0xff] (!%p3357_p2) }
 0xa2b   : > { %3738 = vmatpush3.bf16.msra.mxu0 (!%p3357_p2), %v3910_v7 }
 0xa2c   : > { %3739 = vmatprep.subr.bf16.mxu0 (!%p3357_p2), %v4012_v8 }
 0xa2f   : > { %3740 = vmatpush3.bf16.msra.mxu0 (!%p3357_p2), %v3911_v10 }
 0xa30   : > { %3741 = vmatprep.subr.bf16.mxu0 (!%p3357_p2), %v4012_v8 }
 0xa33   : > { %3742 = vmatpush3.bf16.msra.mxu0 %v3912_v60 }
 0xa34   : > { %3743 = vmatprep.subr.bf16.mxu0 %v4012_v8 }
 0xa37   : > { %3744 = vmatpush3.bf16.msra.mxu0 %v3913_v11 }
 0xa3a   : > { %3746 = vmatmul.mubr.msk.bf16.vlgmr.msra.gmra.mrb[0].mxu0 %vm1026_vm2, %v2883_v13 }
 0xb0d   : > { %v2960_v15 = vpop.f32.mrb[0].mxu0 }
 0xb0e   : > { %v2961_v16 = vadd.f32 %v3358_v14, %v2960_v15  ;;  %v3747_v17 = vpop.f32.mrb[1].mxu0 }
 0xb0f   : > { %v2963_v18 = vpop.f32.mrb[2].mxu0 }
 0xb10   : > { %2966 = vst [vmem:[%s865_s22] sm:$0xff] %v2961_v16  ;;  %v3748_v19 = vpop.f32.mrb[3].mxu0 }
 0xb11 PF: > { %s4720_s1 = sld [smem:[#allocation7_spill]]  ;;  %s3365_s4 = sshll.u32 %s3996_s3, 7 }
 0xb12   : > { %s4722_s29 = sld [smem:[#allocation26_spill]]  ;;  %s2981_s2 = sshll.u32 %s865_s22, 4  ;;  %s2982_s2 = int_to_ptr.vmem [resolvable:$true] %s2981_s2 }
 0xb13   : > { %s3914_s26 = scalar_lea.vmem %s2982_s2, 128  ;;  %s4014_s23 = smov [#allocation3]  }
 0xb14   : > { %p3915_p4 = scmp.ne.s32.totalorder %s2982_s2, %s3914_s26  ;;  %s3918_s7 = sshll.u32 %s4014_s23, 4  ;;  %s3919_s7 = int_to_ptr.vmem [resolvable:$false] %s3918_s7 }
 0xb15   : > { %s3920_s8 = scalar_lea.vmem %s3919_s7, 256  ;;  %p3921_p7 = scmp.lt.s32.totalorder %s2982_s2, %s3919_s7 }
 0xb16   : > { %p3916_p5 = pnand %p3915_p4, %p4174_p3  ;;  %p3922_p8 = scmp.lt.s32.totalorder %s3920_s8, %s3914_s26 }
 0xb17   : > { %s4724_s27 = sand.u32 1, %s4720_s1  }
 0xb18   : > { %s4723_s6 = smov %s4722_s29  ;;  %s4601_s0 = scalar_lea.hbm %s4722_s29, %s3365_s4 }
 0xb19   : > { %s2968_s25 = scalar_lea.sflag [#allocation4], %s4724_s27  ;;  %p3917_p6 = pneg %p3916_p5 }
 0xb1a   : > { %p3923_p10 = por %p3922_p8, %p3921_p7 }
 0xb1c   : > { %p3924_p11 = pnand %p3923_p10, %p3917_p6 }
 0xb1e   : > { %3927 = shalt.err (!%p3924_p11)
}
 0xb1f   : > { %s3928_s3 = scalar_lea.hbm %s4601_s0, 128  ;;  %s3932_s1 = scalar_lea.hbm %s4723_s6, 256 }
 0xb20   : > { %p3929_p12 = scmp.ne.s32.totalorder %s4601_s0, %s3928_s3  ;;  %p3933_p1 = scmp.lt.u32.totalorder %s4601_s0, %s4723_s6 }
 0xb21   : > { %p3934_p2 = scmp.lt.u32.totalorder %s3932_s1, %s3928_s3  ;;  %p3936_p5 = scmp.lt.u32.totalorder %s3928_s3, %s4601_s0 }
 0xb22   : > { %p3930_p13 = pnand %p3929_p12, %p4174_p3 }
 0xb23   : > { %p3935_p4 = por %p3934_p2, %p3933_p1 }
 0xb24   : > { %p3931_p0 = pneg %p3930_p13 }
 0xb25   : > { %p3937_p6 = por %p3936_p5, %p3935_p4 }
 0xb27   : > { %p3938_p7 = pnand %p3937_p6, %p3931_p0 }
 0xb29   : > { %3941 = shalt.err (!%p3938_p7)
}
 0xb2a   : > { %3749 = dma.vmem_to_hbm [thread:$0]  (%p4174_p3), %s2982_s2, 128, %s4601_s0, %s2968_s25  }
 0xb2b PF: > { %s4725_s8 = sld [smem:[#allocation11_spill]]  ;;  %s4726_s21 = sld [smem:[#allocation6_spill]] }
 0xb31   : > { %p3755_p8 = scmp.ge.s32.totalorder %s4725_s8, 2  ;;  %s2993_s29 = sand.u32 1, %s4726_s21  }
 0xb32   : > { %s2994_s27 = scalar_lea.sflag [#allocation4], %s2993_s29 }
 0xb33   : > { %p3752_p10 = pnand %p3755_p8, %p4184_p9 }
 0xb35   : > { %3975 = dma.done.wait (!%p3752_p10), %s2994_s27, 128  }
 0xb36   : > { %3977 = vsyncadd (!%p3752_p10), %s2994_s27, 4294967168  ;;  %s34_s0 = sadd.s32 1, %s4725_s8   ;;  %s4728_s2 = sld [smem:[#allocation7_spill]] }
 0xb37   : > { %p31_p11 = scmp.ge.s32.totalorder %s34_s0, 6   ;;  %s4729_s25 = sld [smem:[#allocation8_spill]] }
 0xb38   : > { %s4730_s26 = sld [smem:[#allocation16_spill]]  ;;  %s4731_s27 = sld [smem:[#allocation9_spill]] }
 0xb39   : > { %s4732_s3 = sld [smem:[#allocation10_spill]]  ;;  %s4733_s28 = sld [smem:[#allocation12_spill]] }
 0xb3a   : > { %s4734_s29 = sld [smem:[#allocation14_spill]]  ;;  %33 = sbr.rel (!%p31_p11) target bundleno = 16 (0x10), region = 195 }
 0xb41   :  { %2999 = vsyncpa [#allocation4], 1 }
 0xb42   :  { %3001 = vsyncpa [#allocation4 + $0x1], 1 }

</bundles_post_ra>
